<compile_context>
chip_gen: v5e
topology: v5e:2x2
jax: 0.10.0
libtpu: 0.0.40
codegen_flags: <defaults>
</compile_context>

<pallas_src>
import functools
import math

import jax
import jax.numpy as jnp
from jax.experimental import pallas as pl
from jax.experimental.pallas import tpu as pltpu


NPAD = 128  # lane-padded width of the packed-vector slabs and classifier output


# ------------------------- fused whole-forward kernel -------------------------
#
# gvec rows:  0 emb_ln_gamma[:H]   1 emb_ln_beta[:H]   2 fc_bias[:NPAD]
# lvec rows:  0 bqkv[:3H]  1 bo[:H]  2 ln1_g[:H]  3 ln1_b[:H]
#             4 b1[:F]     5 b2[:H]  6 ln2_g[:H]  7 ln2_b[:H]

def _fused_forward_kernel(x_ref, bias_ref, gvec_ref, lvec_ref,
                          wqkv_ref, wo_ref, w1_ref, w2_ref, fcw_ref,
                          out_ref, *, nh, num_layers, ffn, mask_id, eps):
    x = x_ref[0]                               # (L, H) f32 pre-LN embeddings
    L, H = x.shape
    F = ffn
    Dh = H // nh
    scale = 1.0 / math.sqrt(Dh)
    bias = bias_ref[0]                         # (1, L) additive mask bias

    g = gvec_ref[...]                          # (8, NPAD) f32
    emb_g, emb_b, fc_b = g[0:1, :H], g[1:2, :H], g[2:3, :]

    def _ln(v, gamma, beta):
        mu = jnp.mean(v, axis=-1, keepdims=True)
        var = jnp.mean((v - mu) ** 2, axis=-1, keepdims=True)
        return (v - mu) * jax.lax.rsqrt(var + eps) * gamma + beta

    # bf16 resident activation; LayerNorm math stays f32.
    h = _ln(x, emb_g, emb_b).astype(jnp.bfloat16)          # (L, H)

    for l in range(num_layers):                # NL=2, unrolled at trace time
        lv = lvec_ref[l]                       # (8, NPAD) packed per-layer vecs
        bqkv = lv[0:1, :3 * H]
        bo = lv[1:2, :H]
        ln1g, ln1b = lv[2:3, :H], lv[3:4, :H]
        b1 = lv[4:5, :F]
        b2 = lv[5:6, :H]
        ln2g, ln2b = lv[6:7, :H], lv[7:8, :H]

        # --------------------- attention sublayer ---------------------
        # fused QKV projection: one MXU push, f32 accumulation
        qkv = jnp.dot(h, wqkv_ref[l],
                      preferred_element_type=jnp.float32) + bqkv   # (L, 3H)
        wo = wo_ref[l]                                             # (H, H) bf16

        attn = None
        for hd in range(nh):                   # nh=2, unrolled
            q = qkv[:, hd * Dh:(hd + 1) * Dh].astype(jnp.bfloat16)
            k = qkv[:, H + hd * Dh:H + (hd + 1) * Dh].astype(jnp.bfloat16)
            v = qkv[:, 2 * H + hd * Dh:2 * H + (hd + 1) * Dh].astype(jnp.bfloat16)
            # q @ k^T via dot_general (contract last dims; no transpose)
            s = jax.lax.dot_general(q, k, (((1,), (1,)), ((), ())),
                                    preferred_element_type=jnp.float32)
            s = s * scale + bias               # (L, L)
            m = jnp.max(s, axis=-1, keepdims=True)
            p = jnp.exp(s - m)
            p = p / jnp.sum(p, axis=-1, keepdims=True)   # exact divide
            o_h = jnp.dot(p.astype(jnp.bfloat16), v,
                          preferred_element_type=jnp.float32)      # (L, Dh)
            # fold head output through the matching W_O rows (sublane slice);
            # summing per-head contributions replaces the lane-concatenate.
            c = jnp.dot(o_h.astype(jnp.bfloat16), wo[hd * Dh:(hd + 1) * Dh, :],
                        preferred_element_type=jnp.float32)        # (L, H)
            attn = c if attn is None else attn + c

        h1 = _ln(h + attn + bo, ln1g, ln1b)    # f32 residual + LayerNorm

        # ------------------------ FFN sublayer ------------------------
        f = jnp.dot(h1.astype(jnp.bfloat16), w1_ref[l],
                    preferred_element_type=jnp.float32) + b1
        # TODO(synk): tanh-approx GELU; BERT default is exact erf (~1e-3 diff).
        f = 0.5 * f * (1.0 + jnp.tanh(0.7978845608028654
                                      * (f + 0.044715 * f * f * f)))
        f = jnp.dot(f.astype(jnp.bfloat16), w2_ref[l],
                    preferred_element_type=jnp.float32) + b2
        h = _ln(h1 + f, ln2g, ln2b).astype(jnp.bfloat16)

    # ------------------------ classifier head ------------------------
    # TODO(synk): nn.Dropout(0.5) treated as identity (inference mode).
    pooled = h[mask_id:mask_id + 1, :]                             # (1, H) bf16
    logits = jnp.dot(pooled, fcw_ref[...],
                     preferred_element_type=jnp.float32) + fc_b    # (1, NPAD)
    out_ref[0] = logits                                            # dense store


def fused_forward(x_emb, bias, params, cfg):
    """x_emb: (B, L, H) f32 pre-LayerNorm embeddings; bias: (B, 1, L) f32."""
    B, L, H = x_emb.shape
    nh, F, NL = cfg["heads"], cfg["ffn"], cfg["layers"]

    grid_spec = pltpu.PrefetchScalarGridSpec(
        num_scalar_prefetch=0,
        grid=(B,),
        in_specs=[
            pl.BlockSpec((1, L, H), lambda b: (b, 0, 0)),         # x_emb
            pl.BlockSpec((1, 1, L), lambda b: (b, 0, 0)),         # mask bias
            pl.BlockSpec((8, NPAD), lambda b: (0, 0)),            # gvec (resident)
            pl.BlockSpec((NL, 8, NPAD), lambda b: (0, 0, 0)),     # lvec (resident)
            pl.BlockSpec((NL, H, 3 * H), lambda b: (0, 0, 0)),    # wqkv stack
            pl.BlockSpec((NL, H, H), lambda b: (0, 0, 0)),        # wo stack
            pl.BlockSpec((NL, H, F), lambda b: (0, 0, 0)),        # w1 stack
            pl.BlockSpec((NL, F, H), lambda b: (0, 0, 0)),        # w2 stack
            pl.BlockSpec((H, NPAD), lambda b: (0, 0)),            # fc_w (padded)
        ],
        out_specs=pl.BlockSpec((1, 1, NPAD), lambda b: (b, 0, 0)),
    )

    out_pad = pl.pallas_call(
        functools.partial(_fused_forward_kernel,
                          nh=nh, num_layers=NL, ffn=F,
                          mask_id=cfg["mask_id"], eps=1e-12),
        out_shape=jax.ShapeDtypeStruct((B, 1, NPAD), jnp.float32),
        grid_spec=grid_spec,
        compiler_params=pltpu.CompilerParams(
            dimension_semantics=("parallel",)),
    )(x_emb, bias, params["gvec"], params["lvec"],
      params["wqkv"], params["wo"], params["w1"], params["w2"], params["fc_w"])
    return out_pad.reshape(B, NPAD)[:, :cfg["num_labels"]]


# ----------------------------- model glue (JAX) -----------------------------

def prompt_embedding(tokens, wte, learned, n_tokens, split1):
    """JAX port of PROMPTEmbedding.forward."""
    e1 = jnp.take(wte, tokens[:, 0:1], axis=0)                          # (B, 1, H)
    e2 = jnp.take(wte, tokens[:, n_tokens + 1:n_tokens + 2], axis=0)    # (B, 1, H)
    e3 = jnp.take(wte, tokens[:, n_tokens + 2:], axis=0)                # (B, L-n-2, H)
    B = tokens.shape[0]
    le = jnp.broadcast_to(learned[None], (B,) + learned.shape)          # (B, n, H)
    return jnp.concatenate([e1, le[:, :split1], e2, le[:, split1:], e3], axis=1)


def init_params(key, cfg):
    H, F, V = cfg["hidden"], cfg["ffn"], cfg["vocab"]
    NL, NLab = cfg["layers"], cfg["num_labels"]
    keys = jax.random.split(key, 8)
    ki = iter(range(8))

    def nrm(shape):
        return 0.02 * jax.random.normal(keys[next(ki)], shape, dtype=jnp.float32)

    # classifier weight, lane-padded to NPAD=128 (dense output stores)
    fc_w = jnp.zeros((H, NPAD), jnp.float32).at[:, :NLab].set(nrm((H, NLab)))

    # packed global slab: row 0 emb_ln gamma, row 1 emb_ln beta, row 2 fc bias
    gvec = jnp.zeros((8, NPAD), jnp.float32)
    gvec = gvec.at[0, :H].set(1.0)

    # packed per-layer slab (rows documented at the kernel); LN gammas = 1,
    # all projection biases / LN betas = 0 in this synthetic init.
    lvec = jnp.zeros((NL, 8, NPAD), jnp.float32)
    lvec = lvec.at[:, 2, :H].set(1.0)        # ln1 gamma
    lvec = lvec.at[:, 6, :H].set(1.0)        # ln2 gamma

    params = {
        "wte": nrm((V, H)),
        "pos_emb": nrm((cfg["max_pos"], H)),
        "type_emb": nrm((2, H)),
        "gvec": gvec,
        "lvec": lvec,
        # per-layer matmul weights stacked on a leading layer axis, bf16
        "wqkv": nrm((NL, H, 3 * H)).astype(jnp.bfloat16),
        "wo": nrm((NL, H, H)).astype(jnp.bfloat16),
        "w1": nrm((NL, H, F)).astype(jnp.bfloat16),
        "w2": nrm((NL, F, H)).astype(jnp.bfloat16),
        "fc_w": fc_w.astype(jnp.bfloat16),
    }
    # initialize_from_vocab=True: learned prompt = first n_tokens rows of wte
    params["learned"] = params["wte"][: cfg["n_tokens"]]
    return params


def eae_model_prompt_forward(params, input_ids, token_type_ids, input_mask, cfg):
    B, L = input_ids.shape

    # --- embeddings (PROMPTEmbedding replaces the word-embedding table) ---
    x = prompt_embedding(input_ids, params["wte"], params["learned"],
                         cfg["n_tokens"], cfg["split1"])
    x = (x + params["pos_emb"][None, :L]
         + jnp.take(params["type_emb"], token_type_ids, axis=0))        # (B, L, H)

    # additive attention-mask bias, broadcast across heads inside the kernel
    bias = ((1.0 - input_mask.astype(jnp.float32)) * -1e9)[:, None, :]  # (B, 1, L)

    return fused_forward(x, bias, params, cfg)                          # (B, labels)


# --------------------------------- driver ---------------------------------

if __name__ == "__main__":
    cfg = dict(vocab=50, hidden=32, heads=2, ffn=64, layers=2, max_pos=16,
               n_tokens=4, split1=2, mask_id=0, num_labels=4)

    key = jax.random.PRNGKey(0)
    kp, kid = jax.random.split(key)
    params = init_params(kp, cfg)

    B, L = 2, 16
    input_ids = jax.random.randint(kid, (B, L), 0, cfg["vocab"], dtype=jnp.int32)
    token_type_ids = jnp.zeros((B, L), dtype=jnp.int32)
    input_mask = jnp.concatenate(
        [jnp.ones((B, L - 2), jnp.int32), jnp.zeros((B, 2), jnp.int32)], axis=1)

    forward = jax.jit(
        lambda p, i, t, m: eae_model_prompt_forward(p, i, t, m, cfg))
    out = forward(params, input_ids, token_type_ids, input_mask)
    out = jax.block_until_ready(out)

    assert out.shape == (B, cfg["num_labels"])
    assert bool(jnp.all(jnp.isfinite(out)))
    print("KERNEL_OK")
</pallas_src>

<mosaic_0001>
module attributes {stable_mosaic.version = 11 : i64} {
  func.func @_fused_forward_kernel(%arg0: i32, %arg1: memref<1x16x32xf32, #tpu.memory_space<vmem>>, %arg2: memref<1x1x16xf32, #tpu.memory_space<vmem>>, %arg3: memref<8x128xf32, #tpu.memory_space<vmem>>, %arg4: memref<2x8x128xf32, #tpu.memory_space<vmem>>, %arg5: memref<2x32x96xbf16, #tpu.memory_space<vmem>>, %arg6: memref<2x32x32xbf16, #tpu.memory_space<vmem>>, %arg7: memref<2x32x64xbf16, #tpu.memory_space<vmem>>, %arg8: memref<2x64x32xbf16, #tpu.memory_space<vmem>>, %arg9: memref<32x128xbf16, #tpu.memory_space<vmem>>, %arg10: memref<1x1x128xf32, #tpu.memory_space<vmem>>) attributes {dimension_semantics = [#tpu.dimension_semantics<parallel>], iteration_bounds = array<i64: 2>, scalar_prefetch = 0 : i64, scratch_operands = 0 : i64, tpu.core_type = #tpu.core_type<tc>, window_params = [{transform_indices = @transform_0, window_bounds = array<i64: 1, 16, 32>}, {transform_indices = @transform_1, window_bounds = array<i64: 1, 1, 16>}, {pipeline_mode = #tpu.pipeline_mode<synchronous>, transform_indices = @transform_2, window_bounds = array<i64: 8, 128>}, {pipeline_mode = #tpu.pipeline_mode<synchronous>, transform_indices = @transform_3, window_bounds = array<i64: 2, 8, 128>}, {pipeline_mode = #tpu.pipeline_mode<synchronous>, transform_indices = @transform_4, window_bounds = array<i64: 2, 32, 96>}, {pipeline_mode = #tpu.pipeline_mode<synchronous>, transform_indices = @transform_5, window_bounds = array<i64: 2, 32, 32>}, {pipeline_mode = #tpu.pipeline_mode<synchronous>, transform_indices = @transform_6, window_bounds = array<i64: 2, 32, 64>}, {pipeline_mode = #tpu.pipeline_mode<synchronous>, transform_indices = @transform_7, window_bounds = array<i64: 2, 64, 32>}, {pipeline_mode = #tpu.pipeline_mode<synchronous>, transform_indices = @transform_8, window_bounds = array<i64: 32, 128>}, {transform_indices = @transform_9, window_bounds = array<i64: 1, 1, 128>}]} {
    %c0 = arith.constant 0 : index
    %c0_0 = arith.constant 0 : index
    %c0_1 = arith.constant 0 : index
    %0 = vector.load %arg1[%c0, %c0_0, %c0_1] : memref<1x16x32xf32, #tpu.memory_space<vmem>>, vector<1x16x32xf32>
    %1 = vector.shape_cast %0 : vector<1x16x32xf32> to vector<16x32xf32>
    %c0_2 = arith.constant 0 : index
    %c0_3 = arith.constant 0 : index
    %c0_4 = arith.constant 0 : index
    %2 = vector.load %arg2[%c0_2, %c0_3, %c0_4] : memref<1x1x16xf32, #tpu.memory_space<vmem>>, vector<1x1x16xf32>
    %3 = vector.shape_cast %2 : vector<1x1x16xf32> to vector<1x16xf32>
    %c0_5 = arith.constant 0 : index
    %c0_6 = arith.constant 0 : index
    %4 = vector.load %arg3[%c0_5, %c0_6] : memref<8x128xf32, #tpu.memory_space<vmem>>, vector<8x128xf32>
    %5 = vector.extract_strided_slice %4 {offsets = [0, 0], sizes = [1, 32], strides = [1, 1]} : vector<8x128xf32> to vector<1x32xf32>
    %6 = vector.extract_strided_slice %4 {offsets = [1, 0], sizes = [1, 32], strides = [1, 1]} : vector<8x128xf32> to vector<1x32xf32>
    %7 = vector.extract_strided_slice %4 {offsets = [2, 0], sizes = [1, 128], strides = [1, 1]} : vector<8x128xf32> to vector<1x128xf32>
    %cst = arith.constant dense<0.000000e+00> : vector<16xf32>
    %8 = vector.multi_reduction <add>, %1, %cst [1] : vector<16x32xf32> to vector<16xf32>
    %9 = vector.shape_cast %8 : vector<16xf32> to vector<16x1xf32>
    %cst_7 = arith.constant 3.200000e+01 : f32
    %10 = vector.broadcast %cst_7 : f32 to vector<16x1xf32>
    %11 = arith.divf %9, %10 : vector<16x1xf32>
    %12 = vector.broadcast %11 : vector<16x1xf32> to vector<16x32xf32>
    %13 = arith.subf %1, %12 : vector<16x32xf32>
    %14 = arith.mulf %13, %13 : vector<16x32xf32>
    %cst_8 = arith.constant dense<0.000000e+00> : vector<16xf32>
    %15 = vector.multi_reduction <add>, %14, %cst_8 [1] : vector<16x32xf32> to vector<16xf32>
    %16 = vector.shape_cast %15 : vector<16xf32> to vector<16x1xf32>
    %cst_9 = arith.constant 3.200000e+01 : f32
    %17 = vector.broadcast %cst_9 : f32 to vector<16x1xf32>
    %18 = arith.divf %16, %17 : vector<16x1xf32>
    %19 = vector.broadcast %11 : vector<16x1xf32> to vector<16x32xf32>
    %20 = arith.subf %1, %19 : vector<16x32xf32>
    %cst_10 = arith.constant 9.99999996E-13 : f32
    %21 = vector.broadcast %cst_10 : f32 to vector<16x1xf32>
    %22 = arith.addf %18, %21 : vector<16x1xf32>
    %23 = math.rsqrt %22 : vector<16x1xf32>
    %24 = vector.broadcast %23 : vector<16x1xf32> to vector<16x32xf32>
    %25 = arith.mulf %20, %24 : vector<16x32xf32>
    %26 = vector.broadcast %5 : vector<1x32xf32> to vector<16x32xf32>
    %27 = arith.mulf %25, %26 : vector<16x32xf32>
    %28 = vector.broadcast %6 : vector<1x32xf32> to vector<16x32xf32>
    %29 = arith.addf %27, %28 : vector<16x32xf32>
    %30 = arith.truncf %29 : vector<16x32xf32> to vector<16x32xbf16>
    %c0_11 = arith.constant 0 : index
    %c0_12 = arith.constant 0 : index
    %c0_13 = arith.constant 0 : index
    %31 = vector.load %arg4[%c0_11, %c0_12, %c0_13] : memref<2x8x128xf32, #tpu.memory_space<vmem>>, vector<1x8x128xf32>
    %32 = vector.shape_cast %31 : vector<1x8x128xf32> to vector<8x128xf32>
    %33 = vector.extract_strided_slice %32 {offsets = [0, 0], sizes = [1, 96], strides = [1, 1]} : vector<8x128xf32> to vector<1x96xf32>
    %34 = vector.extract_strided_slice %32 {offsets = [1, 0], sizes = [1, 32], strides = [1, 1]} : vector<8x128xf32> to vector<1x32xf32>
    %35 = vector.extract_strided_slice %32 {offsets = [2, 0], sizes = [1, 32], strides = [1, 1]} : vector<8x128xf32> to vector<1x32xf32>
    %36 = vector.extract_strided_slice %32 {offsets = [3, 0], sizes = [1, 32], strides = [1, 1]} : vector<8x128xf32> to vector<1x32xf32>
    %37 = vector.extract_strided_slice %32 {offsets = [4, 0], sizes = [1, 64], strides = [1, 1]} : vector<8x128xf32> to vector<1x64xf32>
    %38 = vector.extract_strided_slice %32 {offsets = [5, 0], sizes = [1, 32], strides = [1, 1]} : vector<8x128xf32> to vector<1x32xf32>
    %39 = vector.extract_strided_slice %32 {offsets = [6, 0], sizes = [1, 32], strides = [1, 1]} : vector<8x128xf32> to vector<1x32xf32>
    %40 = vector.extract_strided_slice %32 {offsets = [7, 0], sizes = [1, 32], strides = [1, 1]} : vector<8x128xf32> to vector<1x32xf32>
    %c0_14 = arith.constant 0 : index
    %c0_15 = arith.constant 0 : index
    %c0_16 = arith.constant 0 : index
    %41 = vector.load %arg5[%c0_14, %c0_15, %c0_16] : memref<2x32x96xbf16, #tpu.memory_space<vmem>>, vector<1x32x96xbf16>
    %42 = vector.shape_cast %41 : vector<1x32x96xbf16> to vector<32x96xbf16>
    %cst_17 = arith.constant dense<0.000000e+00> : vector<16x96xf32>
    %43 = tpu.matmul %30, %42, %cst_17 {dimension_numbers = #tpu.dot_dimension_numbers<[1], [0], [0], [1], [0, 0, 1, 1], [], []>} : vector<16x32xbf16>, vector<32x96xbf16>, vector<16x96xf32> -> vector<16x96xf32>
    %44 = vector.broadcast %33 : vector<1x96xf32> to vector<16x96xf32>
    %45 = arith.addf %43, %44 : vector<16x96xf32>
    %c0_18 = arith.constant 0 : index
    %c0_19 = arith.constant 0 : index
    %c0_20 = arith.constant 0 : index
    %46 = vector.load %arg6[%c0_18, %c0_19, %c0_20] : memref<2x32x32xbf16, #tpu.memory_space<vmem>>, vector<1x32x32xbf16>
    %47 = vector.shape_cast %46 : vector<1x32x32xbf16> to vector<32x32xbf16>
    %48 = vector.extract_strided_slice %45 {offsets = [0, 0], sizes = [16, 16], strides = [1, 1]} : vector<16x96xf32> to vector<16x16xf32>
    %49 = arith.truncf %48 : vector<16x16xf32> to vector<16x16xbf16>
    %50 = vector.extract_strided_slice %45 {offsets = [0, 32], sizes = [16, 16], strides = [1, 1]} : vector<16x96xf32> to vector<16x16xf32>
    %51 = arith.truncf %50 : vector<16x16xf32> to vector<16x16xbf16>
    %52 = vector.extract_strided_slice %45 {offsets = [0, 64], sizes = [16, 16], strides = [1, 1]} : vector<16x96xf32> to vector<16x16xf32>
    %53 = arith.truncf %52 : vector<16x16xf32> to vector<16x16xbf16>
    %cst_21 = arith.constant dense<0.000000e+00> : vector<16x16xf32>
    %54 = tpu.matmul %49, %51, %cst_21 {dimension_numbers = #tpu.dot_dimension_numbers<[1], [1], [0], [0], [0, 0, 1, 0], [], []>} : vector<16x16xbf16>, vector<16x16xbf16>, vector<16x16xf32> -> vector<16x16xf32>
    %cst_22 = arith.constant 2.500000e-01 : f32
    %55 = vector.broadcast %cst_22 : f32 to vector<16x16xf32>
    %56 = arith.mulf %54, %55 : vector<16x16xf32>
    %57 = vector.broadcast %3 : vector<1x16xf32> to vector<16x16xf32>
    %58 = arith.addf %56, %57 : vector<16x16xf32>
    %cst_23 = arith.constant dense<0xFF800000> : vector<16xf32>
    %59 = vector.multi_reduction <maximumf>, %58, %cst_23 [1] : vector<16x16xf32> to vector<16xf32>
    %60 = vector.shape_cast %59 : vector<16xf32> to vector<16x1xf32>
    %61 = vector.broadcast %60 : vector<16x1xf32> to vector<16x16xf32>
    %62 = arith.subf %58, %61 : vector<16x16xf32>
    %63 = math.exp %62 : vector<16x16xf32>
    %cst_24 = arith.constant dense<0.000000e+00> : vector<16xf32>
    %64 = vector.multi_reduction <add>, %63, %cst_24 [1] : vector<16x16xf32> to vector<16xf32>
    %65 = vector.shape_cast %64 : vector<16xf32> to vector<16x1xf32>
    %66 = vector.broadcast %65 : vector<16x1xf32> to vector<16x16xf32>
    %67 = arith.divf %63, %66 : vector<16x16xf32>
    %68 = arith.truncf %67 : vector<16x16xf32> to vector<16x16xbf16>
    %cst_25 = arith.constant dense<0.000000e+00> : vector<16x16xf32>
    %69 = tpu.matmul %68, %53, %cst_25 {dimension_numbers = #tpu.dot_dimension_numbers<[1], [0], [0], [1], [0, 0, 1, 1], [], []>} : vector<16x16xbf16>, vector<16x16xbf16>, vector<16x16xf32> -> vector<16x16xf32>
    %70 = arith.truncf %69 : vector<16x16xf32> to vector<16x16xbf16>
    %71 = vector.extract_strided_slice %47 {offsets = [0, 0], sizes = [16, 32], strides = [1, 1]} : vector<32x32xbf16> to vector<16x32xbf16>
    %cst_26 = arith.constant dense<0.000000e+00> : vector<16x32xf32>
    %72 = tpu.matmul %70, %71, %cst_26 {dimension_numbers = #tpu.dot_dimension_numbers<[1], [0], [0], [1], [0, 0, 1, 1], [], []>} : vector<16x16xbf16>, vector<16x32xbf16>, vector<16x32xf32> -> vector<16x32xf32>
    %73 = vector.extract_strided_slice %45 {offsets = [0, 16], sizes = [16, 16], strides = [1, 1]} : vector<16x96xf32> to vector<16x16xf32>
    %74 = arith.truncf %73 : vector<16x16xf32> to vector<16x16xbf16>
    %75 = vector.extract_strided_slice %45 {offsets = [0, 48], sizes = [16, 16], strides = [1, 1]} : vector<16x96xf32> to vector<16x16xf32>
    %76 = arith.truncf %75 : vector<16x16xf32> to vector<16x16xbf16>
    %77 = vector.extract_strided_slice %45 {offsets = [0, 80], sizes = [16, 16], strides = [1, 1]} : vector<16x96xf32> to vector<16x16xf32>
    %78 = arith.truncf %77 : vector<16x16xf32> to vector<16x16xbf16>
    %cst_27 = arith.constant dense<0.000000e+00> : vector<16x16xf32>
    %79 = tpu.matmul %74, %76, %cst_27 {dimension_numbers = #tpu.dot_dimension_numbers<[1], [1], [0], [0], [0, 0, 1, 0], [], []>} : vector<16x16xbf16>, vector<16x16xbf16>, vector<16x16xf32> -> vector<16x16xf32>
    %cst_28 = arith.constant 2.500000e-01 : f32
    %80 = vector.broadcast %cst_28 : f32 to vector<16x16xf32>
    %81 = arith.mulf %79, %80 : vector<16x16xf32>
    %82 = vector.broadcast %3 : vector<1x16xf32> to vector<16x16xf32>
    %83 = arith.addf %81, %82 : vector<16x16xf32>
    %cst_29 = arith.constant dense<0xFF800000> : vector<16xf32>
    %84 = vector.multi_reduction <maximumf>, %83, %cst_29 [1] : vector<16x16xf32> to vector<16xf32>
    %85 = vector.shape_cast %84 : vector<16xf32> to vector<16x1xf32>
    %86 = vector.broadcast %85 : vector<16x1xf32> to vector<16x16xf32>
    %87 = arith.subf %83, %86 : vector<16x16xf32>
    %88 = math.exp %87 : vector<16x16xf32>
    %cst_30 = arith.constant dense<0.000000e+00> : vector<16xf32>
    %89 = vector.multi_reduction <add>, %88, %cst_30 [1] : vector<16x16xf32> to vector<16xf32>
    %90 = vector.shape_cast %89 : vector<16xf32> to vector<16x1xf32>
    %91 = vector.broadcast %90 : vector<16x1xf32> to vector<16x16xf32>
    %92 = arith.divf %88, %91 : vector<16x16xf32>
    %93 = arith.truncf %92 : vector<16x16xf32> to vector<16x16xbf16>
    %cst_31 = arith.constant dense<0.000000e+00> : vector<16x16xf32>
    %94 = tpu.matmul %93, %78, %cst_31 {dimension_numbers = #tpu.dot_dimension_numbers<[1], [0], [0], [1], [0, 0, 1, 1], [], []>} : vector<16x16xbf16>, vector<16x16xbf16>, vector<16x16xf32> -> vector<16x16xf32>
    %95 = arith.truncf %94 : vector<16x16xf32> to vector<16x16xbf16>
    %96 = vector.extract_strided_slice %47 {offsets = [16, 0], sizes = [16, 32], strides = [1, 1]} : vector<32x32xbf16> to vector<16x32xbf16>
    %cst_32 = arith.constant dense<0.000000e+00> : vector<16x32xf32>
    %97 = tpu.matmul %95, %96, %cst_32 {dimension_numbers = #tpu.dot_dimension_numbers<[1], [0], [0], [1], [0, 0, 1, 1], [], []>} : vector<16x16xbf16>, vector<16x32xbf16>, vector<16x32xf32> -> vector<16x32xf32>
    %98 = arith.addf %72, %97 : vector<16x32xf32>
    %99 = arith.extf %30 : vector<16x32xbf16> to vector<16x32xf32>
    %100 = arith.addf %99, %98 : vector<16x32xf32>
    %101 = vector.broadcast %34 : vector<1x32xf32> to vector<16x32xf32>
    %102 = arith.addf %100, %101 : vector<16x32xf32>
    %cst_33 = arith.constant dense<0.000000e+00> : vector<16xf32>
    %103 = vector.multi_reduction <add>, %102, %cst_33 [1] : vector<16x32xf32> to vector<16xf32>
    %104 = vector.shape_cast %103 : vector<16xf32> to vector<16x1xf32>
    %cst_34 = arith.constant 3.200000e+01 : f32
    %105 = vector.broadcast %cst_34 : f32 to vector<16x1xf32>
    %106 = arith.divf %104, %105 : vector<16x1xf32>
    %107 = vector.broadcast %106 : vector<16x1xf32> to vector<16x32xf32>
    %108 = arith.subf %102, %107 : vector<16x32xf32>
    %109 = arith.mulf %108, %108 : vector<16x32xf32>
    %cst_35 = arith.constant dense<0.000000e+00> : vector<16xf32>
    %110 = vector.multi_reduction <add>, %109, %cst_35 [1] : vector<16x32xf32> to vector<16xf32>
    %111 = vector.shape_cast %110 : vector<16xf32> to vector<16x1xf32>
    %cst_36 = arith.constant 3.200000e+01 : f32
    %112 = vector.broadcast %cst_36 : f32 to vector<16x1xf32>
    %113 = arith.divf %111, %112 : vector<16x1xf32>
    %114 = vector.broadcast %106 : vector<16x1xf32> to vector<16x32xf32>
    %115 = arith.subf %102, %114 : vector<16x32xf32>
    %cst_37 = arith.constant 9.99999996E-13 : f32
    %116 = vector.broadcast %cst_37 : f32 to vector<16x1xf32>
    %117 = arith.addf %113, %116 : vector<16x1xf32>
    %118 = math.rsqrt %117 : vector<16x1xf32>
    %119 = vector.broadcast %118 : vector<16x1xf32> to vector<16x32xf32>
    %120 = arith.mulf %115, %119 : vector<16x32xf32>
    %121 = vector.broadcast %35 : vector<1x32xf32> to vector<16x32xf32>
    %122 = arith.mulf %120, %121 : vector<16x32xf32>
    %123 = vector.broadcast %36 : vector<1x32xf32> to vector<16x32xf32>
    %124 = arith.addf %122, %123 : vector<16x32xf32>
    %125 = arith.truncf %124 : vector<16x32xf32> to vector<16x32xbf16>
    %c0_38 = arith.constant 0 : index
    %c0_39 = arith.constant 0 : index
    %c0_40 = arith.constant 0 : index
    %126 = vector.load %arg7[%c0_38, %c0_39, %c0_40] : memref<2x32x64xbf16, #tpu.memory_space<vmem>>, vector<1x32x64xbf16>
    %127 = vector.shape_cast %126 : vector<1x32x64xbf16> to vector<32x64xbf16>
    %cst_41 = arith.constant dense<0.000000e+00> : vector<16x64xf32>
    %128 = tpu.matmul %125, %127, %cst_41 {dimension_numbers = #tpu.dot_dimension_numbers<[1], [0], [0], [1], [0, 0, 1, 1], [], []>} : vector<16x32xbf16>, vector<32x64xbf16>, vector<16x64xf32> -> vector<16x64xf32>
    %129 = vector.broadcast %37 : vector<1x64xf32> to vector<16x64xf32>
    %130 = arith.addf %128, %129 : vector<16x64xf32>
    %cst_42 = arith.constant 5.000000e-01 : f32
    %131 = vector.broadcast %cst_42 : f32 to vector<16x64xf32>
    %132 = arith.mulf %131, %130 : vector<16x64xf32>
    %cst_43 = arith.constant 4.471500e-02 : f32
    %133 = vector.broadcast %cst_43 : f32 to vector<16x64xf32>
    %134 = arith.mulf %133, %130 : vector<16x64xf32>
    %135 = arith.mulf %134, %130 : vector<16x64xf32>
    %136 = arith.mulf %135, %130 : vector<16x64xf32>
    %137 = arith.addf %130, %136 : vector<16x64xf32>
    %cst_44 = arith.constant 0.797884583 : f32
    %138 = vector.broadcast %cst_44 : f32 to vector<16x64xf32>
    %139 = arith.mulf %138, %137 : vector<16x64xf32>
    %140 = math.tanh %139 : vector<16x64xf32>
    %cst_45 = arith.constant 1.000000e+00 : f32
    %141 = vector.broadcast %cst_45 : f32 to vector<16x64xf32>
    %142 = arith.addf %141, %140 : vector<16x64xf32>
    %143 = arith.mulf %132, %142 : vector<16x64xf32>
    %144 = arith.truncf %143 : vector<16x64xf32> to vector<16x64xbf16>
    %c0_46 = arith.constant 0 : index
    %c0_47 = arith.constant 0 : index
    %c0_48 = arith.constant 0 : index
    %145 = vector.load %arg8[%c0_46, %c0_47, %c0_48] : memref<2x64x32xbf16, #tpu.memory_space<vmem>>, vector<1x64x32xbf16>
    %146 = vector.shape_cast %145 : vector<1x64x32xbf16> to vector<64x32xbf16>
    %cst_49 = arith.constant dense<0.000000e+00> : vector<16x32xf32>
    %147 = tpu.matmul %144, %146, %cst_49 {dimension_numbers = #tpu.dot_dimension_numbers<[1], [0], [0], [1], [0, 0, 1, 1], [], []>} : vector<16x64xbf16>, vector<64x32xbf16>, vector<16x32xf32> -> vector<16x32xf32>
    %148 = vector.broadcast %38 : vector<1x32xf32> to vector<16x32xf32>
    %149 = arith.addf %147, %148 : vector<16x32xf32>
    %150 = arith.addf %124, %149 : vector<16x32xf32>
    %cst_50 = arith.constant dense<0.000000e+00> : vector<16xf32>
    %151 = vector.multi_reduction <add>, %150, %cst_50 [1] : vector<16x32xf32> to vector<16xf32>
    %152 = vector.shape_cast %151 : vector<16xf32> to vector<16x1xf32>
    %cst_51 = arith.constant 3.200000e+01 : f32
    %153 = vector.broadcast %cst_51 : f32 to vector<16x1xf32>
    %154 = arith.divf %152, %153 : vector<16x1xf32>
    %155 = vector.broadcast %154 : vector<16x1xf32> to vector<16x32xf32>
    %156 = arith.subf %150, %155 : vector<16x32xf32>
    %157 = arith.mulf %156, %156 : vector<16x32xf32>
    %cst_52 = arith.constant dense<0.000000e+00> : vector<16xf32>
    %158 = vector.multi_reduction <add>, %157, %cst_52 [1] : vector<16x32xf32> to vector<16xf32>
    %159 = vector.shape_cast %158 : vector<16xf32> to vector<16x1xf32>
    %cst_53 = arith.constant 3.200000e+01 : f32
    %160 = vector.broadcast %cst_53 : f32 to vector<16x1xf32>
    %161 = arith.divf %159, %160 : vector<16x1xf32>
    %162 = vector.broadcast %154 : vector<16x1xf32> to vector<16x32xf32>
    %163 = arith.subf %150, %162 : vector<16x32xf32>
    %cst_54 = arith.constant 9.99999996E-13 : f32
    %164 = vector.broadcast %cst_54 : f32 to vector<16x1xf32>
    %165 = arith.addf %161, %164 : vector<16x1xf32>
    %166 = math.rsqrt %165 : vector<16x1xf32>
    %167 = vector.broadcast %166 : vector<16x1xf32> to vector<16x32xf32>
    %168 = arith.mulf %163, %167 : vector<16x32xf32>
    %169 = vector.broadcast %39 : vector<1x32xf32> to vector<16x32xf32>
    %170 = arith.mulf %168, %169 : vector<16x32xf32>
    %171 = vector.broadcast %40 : vector<1x32xf32> to vector<16x32xf32>
    %172 = arith.addf %170, %171 : vector<16x32xf32>
    %173 = arith.truncf %172 : vector<16x32xf32> to vector<16x32xbf16>
    %c1 = arith.constant 1 : index
    %c0_55 = arith.constant 0 : index
    %c0_56 = arith.constant 0 : index
    %174 = vector.load %arg4[%c1, %c0_55, %c0_56] : memref<2x8x128xf32, #tpu.memory_space<vmem>>, vector<1x8x128xf32>
    %175 = vector.shape_cast %174 : vector<1x8x128xf32> to vector<8x128xf32>
    %176 = vector.extract_strided_slice %175 {offsets = [0, 0], sizes = [1, 96], strides = [1, 1]} : vector<8x128xf32> to vector<1x96xf32>
    %177 = vector.extract_strided_slice %175 {offsets = [1, 0], sizes = [1, 32], strides = [1, 1]} : vector<8x128xf32> to vector<1x32xf32>
    %178 = vector.extract_strided_slice %175 {offsets = [2, 0], sizes = [1, 32], strides = [1, 1]} : vector<8x128xf32> to vector<1x32xf32>
    %179 = vector.extract_strided_slice %175 {offsets = [3, 0], sizes = [1, 32], strides = [1, 1]} : vector<8x128xf32> to vector<1x32xf32>
    %180 = vector.extract_strided_slice %175 {offsets = [4, 0], sizes = [1, 64], strides = [1, 1]} : vector<8x128xf32> to vector<1x64xf32>
    %181 = vector.extract_strided_slice %175 {offsets = [5, 0], sizes = [1, 32], strides = [1, 1]} : vector<8x128xf32> to vector<1x32xf32>
    %182 = vector.extract_strided_slice %175 {offsets = [6, 0], sizes = [1, 32], strides = [1, 1]} : vector<8x128xf32> to vector<1x32xf32>
    %183 = vector.extract_strided_slice %175 {offsets = [7, 0], sizes = [1, 32], strides = [1, 1]} : vector<8x128xf32> to vector<1x32xf32>
    %c1_57 = arith.constant 1 : index
    %c0_58 = arith.constant 0 : index
    %c0_59 = arith.constant 0 : index
    %184 = vector.load %arg5[%c1_57, %c0_58, %c0_59] : memref<2x32x96xbf16, #tpu.memory_space<vmem>>, vector<1x32x96xbf16>
    %185 = vector.shape_cast %184 : vector<1x32x96xbf16> to vector<32x96xbf16>
    %cst_60 = arith.constant dense<0.000000e+00> : vector<16x96xf32>
    %186 = tpu.matmul %173, %185, %cst_60 {dimension_numbers = #tpu.dot_dimension_numbers<[1], [0], [0], [1], [0, 0, 1, 1], [], []>} : vector<16x32xbf16>, vector<32x96xbf16>, vector<16x96xf32> -> vector<16x96xf32>
    %187 = vector.broadcast %176 : vector<1x96xf32> to vector<16x96xf32>
    %188 = arith.addf %186, %187 : vector<16x96xf32>
    %c1_61 = arith.constant 1 : index
    %c0_62 = arith.constant 0 : index
    %c0_63 = arith.constant 0 : index
    %189 = vector.load %arg6[%c1_61, %c0_62, %c0_63] : memref<2x32x32xbf16, #tpu.memory_space<vmem>>, vector<1x32x32xbf16>
    %190 = vector.shape_cast %189 : vector<1x32x32xbf16> to vector<32x32xbf16>
    %191 = vector.extract_strided_slice %188 {offsets = [0, 0], sizes = [16, 16], strides = [1, 1]} : vector<16x96xf32> to vector<16x16xf32>
    %192 = arith.truncf %191 : vector<16x16xf32> to vector<16x16xbf16>
    %193 = vector.extract_strided_slice %188 {offsets = [0, 32], sizes = [16, 16], strides = [1, 1]} : vector<16x96xf32> to vector<16x16xf32>
    %194 = arith.truncf %193 : vector<16x16xf32> to vector<16x16xbf16>
    %195 = vector.extract_strided_slice %188 {offsets = [0, 64], sizes = [16, 16], strides = [1, 1]} : vector<16x96xf32> to vector<16x16xf32>
    %196 = arith.truncf %195 : vector<16x16xf32> to vector<16x16xbf16>
    %cst_64 = arith.constant dense<0.000000e+00> : vector<16x16xf32>
    %197 = tpu.matmul %192, %194, %cst_64 {dimension_numbers = #tpu.dot_dimension_numbers<[1], [1], [0], [0], [0, 0, 1, 0], [], []>} : vector<16x16xbf16>, vector<16x16xbf16>, vector<16x16xf32> -> vector<16x16xf32>
    %cst_65 = arith.constant 2.500000e-01 : f32
    %198 = vector.broadcast %cst_65 : f32 to vector<16x16xf32>
    %199 = arith.mulf %197, %198 : vector<16x16xf32>
    %200 = vector.broadcast %3 : vector<1x16xf32> to vector<16x16xf32>
    %201 = arith.addf %199, %200 : vector<16x16xf32>
    %cst_66 = arith.constant dense<0xFF800000> : vector<16xf32>
    %202 = vector.multi_reduction <maximumf>, %201, %cst_66 [1] : vector<16x16xf32> to vector<16xf32>
    %203 = vector.shape_cast %202 : vector<16xf32> to vector<16x1xf32>
    %204 = vector.broadcast %203 : vector<16x1xf32> to vector<16x16xf32>
    %205 = arith.subf %201, %204 : vector<16x16xf32>
    %206 = math.exp %205 : vector<16x16xf32>
    %cst_67 = arith.constant dense<0.000000e+00> : vector<16xf32>
    %207 = vector.multi_reduction <add>, %206, %cst_67 [1] : vector<16x16xf32> to vector<16xf32>
    %208 = vector.shape_cast %207 : vector<16xf32> to vector<16x1xf32>
    %209 = vector.broadcast %208 : vector<16x1xf32> to vector<16x16xf32>
    %210 = arith.divf %206, %209 : vector<16x16xf32>
    %211 = arith.truncf %210 : vector<16x16xf32> to vector<16x16xbf16>
    %cst_68 = arith.constant dense<0.000000e+00> : vector<16x16xf32>
    %212 = tpu.matmul %211, %196, %cst_68 {dimension_numbers = #tpu.dot_dimension_numbers<[1], [0], [0], [1], [0, 0, 1, 1], [], []>} : vector<16x16xbf16>, vector<16x16xbf16>, vector<16x16xf32> -> vector<16x16xf32>
    %213 = arith.truncf %212 : vector<16x16xf32> to vector<16x16xbf16>
    %214 = vector.extract_strided_slice %190 {offsets = [0, 0], sizes = [16, 32], strides = [1, 1]} : vector<32x32xbf16> to vector<16x32xbf16>
    %cst_69 = arith.constant dense<0.000000e+00> : vector<16x32xf32>
    %215 = tpu.matmul %213, %214, %cst_69 {dimension_numbers = #tpu.dot_dimension_numbers<[1], [0], [0], [1], [0, 0, 1, 1], [], []>} : vector<16x16xbf16>, vector<16x32xbf16>, vector<16x32xf32> -> vector<16x32xf32>
    %216 = vector.extract_strided_slice %188 {offsets = [0, 16], sizes = [16, 16], strides = [1, 1]} : vector<16x96xf32> to vector<16x16xf32>
    %217 = arith.truncf %216 : vector<16x16xf32> to vector<16x16xbf16>
    %218 = vector.extract_strided_slice %188 {offsets = [0, 48], sizes = [16, 16], strides = [1, 1]} : vector<16x96xf32> to vector<16x16xf32>
    %219 = arith.truncf %218 : vector<16x16xf32> to vector<16x16xbf16>
    %220 = vector.extract_strided_slice %188 {offsets = [0, 80], sizes = [16, 16], strides = [1, 1]} : vector<16x96xf32> to vector<16x16xf32>
    %221 = arith.truncf %220 : vector<16x16xf32> to vector<16x16xbf16>
    %cst_70 = arith.constant dense<0.000000e+00> : vector<16x16xf32>
    %222 = tpu.matmul %217, %219, %cst_70 {dimension_numbers = #tpu.dot_dimension_numbers<[1], [1], [0], [0], [0, 0, 1, 0], [], []>} : vector<16x16xbf16>, vector<16x16xbf16>, vector<16x16xf32> -> vector<16x16xf32>
    %cst_71 = arith.constant 2.500000e-01 : f32
    %223 = vector.broadcast %cst_71 : f32 to vector<16x16xf32>
    %224 = arith.mulf %222, %223 : vector<16x16xf32>
    %225 = vector.broadcast %3 : vector<1x16xf32> to vector<16x16xf32>
    %226 = arith.addf %224, %225 : vector<16x16xf32>
    %cst_72 = arith.constant dense<0xFF800000> : vector<16xf32>
    %227 = vector.multi_reduction <maximumf>, %226, %cst_72 [1] : vector<16x16xf32> to vector<16xf32>
    %228 = vector.shape_cast %227 : vector<16xf32> to vector<16x1xf32>
    %229 = vector.broadcast %228 : vector<16x1xf32> to vector<16x16xf32>
    %230 = arith.subf %226, %229 : vector<16x16xf32>
    %231 = math.exp %230 : vector<16x16xf32>
    %cst_73 = arith.constant dense<0.000000e+00> : vector<16xf32>
    %232 = vector.multi_reduction <add>, %231, %cst_73 [1] : vector<16x16xf32> to vector<16xf32>
    %233 = vector.shape_cast %232 : vector<16xf32> to vector<16x1xf32>
    %234 = vector.broadcast %233 : vector<16x1xf32> to vector<16x16xf32>
    %235 = arith.divf %231, %234 : vector<16x16xf32>
    %236 = arith.truncf %235 : vector<16x16xf32> to vector<16x16xbf16>
    %cst_74 = arith.constant dense<0.000000e+00> : vector<16x16xf32>
    %237 = tpu.matmul %236, %221, %cst_74 {dimension_numbers = #tpu.dot_dimension_numbers<[1], [0], [0], [1], [0, 0, 1, 1], [], []>} : vector<16x16xbf16>, vector<16x16xbf16>, vector<16x16xf32> -> vector<16x16xf32>
    %238 = arith.truncf %237 : vector<16x16xf32> to vector<16x16xbf16>
    %239 = vector.extract_strided_slice %190 {offsets = [16, 0], sizes = [16, 32], strides = [1, 1]} : vector<32x32xbf16> to vector<16x32xbf16>
    %cst_75 = arith.constant dense<0.000000e+00> : vector<16x32xf32>
    %240 = tpu.matmul %238, %239, %cst_75 {dimension_numbers = #tpu.dot_dimension_numbers<[1], [0], [0], [1], [0, 0, 1, 1], [], []>} : vector<16x16xbf16>, vector<16x32xbf16>, vector<16x32xf32> -> vector<16x32xf32>
    %241 = arith.addf %215, %240 : vector<16x32xf32>
    %242 = arith.extf %173 : vector<16x32xbf16> to vector<16x32xf32>
    %243 = arith.addf %242, %241 : vector<16x32xf32>
    %244 = vector.broadcast %177 : vector<1x32xf32> to vector<16x32xf32>
    %245 = arith.addf %243, %244 : vector<16x32xf32>
    %cst_76 = arith.constant dense<0.000000e+00> : vector<16xf32>
    %246 = vector.multi_reduction <add>, %245, %cst_76 [1] : vector<16x32xf32> to vector<16xf32>
    %247 = vector.shape_cast %246 : vector<16xf32> to vector<16x1xf32>
    %cst_77 = arith.constant 3.200000e+01 : f32
    %248 = vector.broadcast %cst_77 : f32 to vector<16x1xf32>
    %249 = arith.divf %247, %248 : vector<16x1xf32>
    %250 = vector.broadcast %249 : vector<16x1xf32> to vector<16x32xf32>
    %251 = arith.subf %245, %250 : vector<16x32xf32>
    %252 = arith.mulf %251, %251 : vector<16x32xf32>
    %cst_78 = arith.constant dense<0.000000e+00> : vector<16xf32>
    %253 = vector.multi_reduction <add>, %252, %cst_78 [1] : vector<16x32xf32> to vector<16xf32>
    %254 = vector.shape_cast %253 : vector<16xf32> to vector<16x1xf32>
    %cst_79 = arith.constant 3.200000e+01 : f32
    %255 = vector.broadcast %cst_79 : f32 to vector<16x1xf32>
    %256 = arith.divf %254, %255 : vector<16x1xf32>
    %257 = vector.broadcast %249 : vector<16x1xf32> to vector<16x32xf32>
    %258 = arith.subf %245, %257 : vector<16x32xf32>
    %cst_80 = arith.constant 9.99999996E-13 : f32
    %259 = vector.broadcast %cst_80 : f32 to vector<16x1xf32>
    %260 = arith.addf %256, %259 : vector<16x1xf32>
    %261 = math.rsqrt %260 : vector<16x1xf32>
    %262 = vector.broadcast %261 : vector<16x1xf32> to vector<16x32xf32>
    %263 = arith.mulf %258, %262 : vector<16x32xf32>
    %264 = vector.broadcast %178 : vector<1x32xf32> to vector<16x32xf32>
    %265 = arith.mulf %263, %264 : vector<16x32xf32>
    %266 = vector.broadcast %179 : vector<1x32xf32> to vector<16x32xf32>
    %267 = arith.addf %265, %266 : vector<16x32xf32>
    %268 = arith.truncf %267 : vector<16x32xf32> to vector<16x32xbf16>
    %c1_81 = arith.constant 1 : index
    %c0_82 = arith.constant 0 : index
    %c0_83 = arith.constant 0 : index
    %269 = vector.load %arg7[%c1_81, %c0_82, %c0_83] : memref<2x32x64xbf16, #tpu.memory_space<vmem>>, vector<1x32x64xbf16>
    %270 = vector.shape_cast %269 : vector<1x32x64xbf16> to vector<32x64xbf16>
    %cst_84 = arith.constant dense<0.000000e+00> : vector<16x64xf32>
    %271 = tpu.matmul %268, %270, %cst_84 {dimension_numbers = #tpu.dot_dimension_numbers<[1], [0], [0], [1], [0, 0, 1, 1], [], []>} : vector<16x32xbf16>, vector<32x64xbf16>, vector<16x64xf32> -> vector<16x64xf32>
    %272 = vector.broadcast %180 : vector<1x64xf32> to vector<16x64xf32>
    %273 = arith.addf %271, %272 : vector<16x64xf32>
    %cst_85 = arith.constant 5.000000e-01 : f32
    %274 = vector.broadcast %cst_85 : f32 to vector<16x64xf32>
    %275 = arith.mulf %274, %273 : vector<16x64xf32>
    %cst_86 = arith.constant 4.471500e-02 : f32
    %276 = vector.broadcast %cst_86 : f32 to vector<16x64xf32>
    %277 = arith.mulf %276, %273 : vector<16x64xf32>
    %278 = arith.mulf %277, %273 : vector<16x64xf32>
    %279 = arith.mulf %278, %273 : vector<16x64xf32>
    %280 = arith.addf %273, %279 : vector<16x64xf32>
    %cst_87 = arith.constant 0.797884583 : f32
    %281 = vector.broadcast %cst_87 : f32 to vector<16x64xf32>
    %282 = arith.mulf %281, %280 : vector<16x64xf32>
    %283 = math.tanh %282 : vector<16x64xf32>
    %cst_88 = arith.constant 1.000000e+00 : f32
    %284 = vector.broadcast %cst_88 : f32 to vector<16x64xf32>
    %285 = arith.addf %284, %283 : vector<16x64xf32>
    %286 = arith.mulf %275, %285 : vector<16x64xf32>
    %287 = arith.truncf %286 : vector<16x64xf32> to vector<16x64xbf16>
    %c1_89 = arith.constant 1 : index
    %c0_90 = arith.constant 0 : index
    %c0_91 = arith.constant 0 : index
    %288 = vector.load %arg8[%c1_89, %c0_90, %c0_91] : memref<2x64x32xbf16, #tpu.memory_space<vmem>>, vector<1x64x32xbf16>
    %289 = vector.shape_cast %288 : vector<1x64x32xbf16> to vector<64x32xbf16>
    %cst_92 = arith.constant dense<0.000000e+00> : vector<16x32xf32>
    %290 = tpu.matmul %287, %289, %cst_92 {dimension_numbers = #tpu.dot_dimension_numbers<[1], [0], [0], [1], [0, 0, 1, 1], [], []>} : vector<16x64xbf16>, vector<64x32xbf16>, vector<16x32xf32> -> vector<16x32xf32>
    %291 = vector.broadcast %181 : vector<1x32xf32> to vector<16x32xf32>
    %292 = arith.addf %290, %291 : vector<16x32xf32>
    %293 = arith.addf %267, %292 : vector<16x32xf32>
    %cst_93 = arith.constant dense<0.000000e+00> : vector<16xf32>
    %294 = vector.multi_reduction <add>, %293, %cst_93 [1] : vector<16x32xf32> to vector<16xf32>
    %295 = vector.shape_cast %294 : vector<16xf32> to vector<16x1xf32>
    %cst_94 = arith.constant 3.200000e+01 : f32
    %296 = vector.broadcast %cst_94 : f32 to vector<16x1xf32>
    %297 = arith.divf %295, %296 : vector<16x1xf32>
    %298 = vector.broadcast %297 : vector<16x1xf32> to vector<16x32xf32>
    %299 = arith.subf %293, %298 : vector<16x32xf32>
    %300 = arith.mulf %299, %299 : vector<16x32xf32>
    %cst_95 = arith.constant dense<0.000000e+00> : vector<16xf32>
    %301 = vector.multi_reduction <add>, %300, %cst_95 [1] : vector<16x32xf32> to vector<16xf32>
    %302 = vector.shape_cast %301 : vector<16xf32> to vector<16x1xf32>
    %cst_96 = arith.constant 3.200000e+01 : f32
    %303 = vector.broadcast %cst_96 : f32 to vector<16x1xf32>
    %304 = arith.divf %302, %303 : vector<16x1xf32>
    %305 = vector.broadcast %297 : vector<16x1xf32> to vector<16x32xf32>
    %306 = arith.subf %293, %305 : vector<16x32xf32>
    %cst_97 = arith.constant 9.99999996E-13 : f32
    %307 = vector.broadcast %cst_97 : f32 to vector<16x1xf32>
    %308 = arith.addf %304, %307 : vector<16x1xf32>
    %309 = math.rsqrt %308 : vector<16x1xf32>
    %310 = vector.broadcast %309 : vector<16x1xf32> to vector<16x32xf32>
    %311 = arith.mulf %306, %310 : vector<16x32xf32>
    %312 = vector.broadcast %182 : vector<1x32xf32> to vector<16x32xf32>
    %313 = arith.mulf %311, %312 : vector<16x32xf32>
    %314 = vector.broadcast %183 : vector<1x32xf32> to vector<16x32xf32>
    %315 = arith.addf %313, %314 : vector<16x32xf32>
    %316 = arith.truncf %315 : vector<16x32xf32> to vector<16x32xbf16>
    %317 = vector.extract_strided_slice %316 {offsets = [0, 0], sizes = [1, 32], strides = [1, 1]} : vector<16x32xbf16> to vector<1x32xbf16>
    %c0_98 = arith.constant 0 : index
    %c0_99 = arith.constant 0 : index
    %318 = vector.load %arg9[%c0_98, %c0_99] : memref<32x128xbf16, #tpu.memory_space<vmem>>, vector<32x128xbf16>
    %cst_100 = arith.constant dense<0.000000e+00> : vector<1x128xf32>
    %319 = tpu.matmul %317, %318, %cst_100 {dimension_numbers = #tpu.dot_dimension_numbers<[1], [0], [0], [1], [0, 0, 1, 1], [], []>} : vector<1x32xbf16>, vector<32x128xbf16>, vector<1x128xf32> -> vector<1x128xf32>
    %320 = arith.addf %319, %7 : vector<1x128xf32>
    %c0_101 = arith.constant 0 : index
    %c0_102 = arith.constant 0 : index
    %c0_103 = arith.constant 0 : index
    %321 = vector.load %arg10[%c0_101, %c0_102, %c0_103] : memref<1x1x128xf32, #tpu.memory_space<vmem>>, vector<1x1x128xf32>
    %322 = vector.shape_cast %321 : vector<1x1x128xf32> to vector<1x128xf32>
    %323 = vector.shape_cast %320 : vector<1x128xf32> to vector<1x1x128xf32>
    tpu.vector_store %arg10[%c0_101, %c0_102, %c0_103], %323 {strides = array<i32>} : memref<1x1x128xf32, #tpu.memory_space<vmem>>, vector<1x1x128xf32>,
    return
  }
  func.func @transform_0(%arg0: i32) -> (i32, i32, i32) {
    %c0_i32 = arith.constant 0 : i32
    %c0_i32_0 = arith.constant 0 : i32
    %c0_i32_1 = arith.constant 0 : i32
    return %arg0, %c0_i32, %c0_i32_0 : i32, i32, i32
  }
  func.func @transform_1(%arg0: i32) -> (i32, i32, i32) {
    %c0_i32 = arith.constant 0 : i32
    %c0_i32_0 = arith.constant 0 : i32
    %c0_i32_1 = arith.constant 0 : i32
    return %arg0, %c0_i32, %c0_i32_0 : i32, i32, i32
  }
  func.func @transform_2(%arg0: i32) -> (i32, i32) {
    %c0_i32 = arith.constant 0 : i32
    %c0_i32_0 = arith.constant 0 : i32
    %c0_i32_1 = arith.constant 0 : i32
    return %c0_i32, %c0_i32_0 : i32, i32
  }
  func.func @transform_3(%arg0: i32) -> (i32, i32, i32) {
    %c0_i32 = arith.constant 0 : i32
    %c0_i32_0 = arith.constant 0 : i32
    %c0_i32_1 = arith.constant 0 : i32
    %c0_i32_2 = arith.constant 0 : i32
    return %c0_i32, %c0_i32_0, %c0_i32_1 : i32, i32, i32
  }
  func.func @transform_4(%arg0: i32) -> (i32, i32, i32) {
    %c0_i32 = arith.constant 0 : i32
    %c0_i32_0 = arith.constant 0 : i32
    %c0_i32_1 = arith.constant 0 : i32
    %c0_i32_2 = arith.constant 0 : i32
    return %c0_i32, %c0_i32_0, %c0_i32_1 : i32, i32, i32
  }
  func.func @transform_5(%arg0: i32) -> (i32, i32, i32) {
    %c0_i32 = arith.constant 0 : i32
    %c0_i32_0 = arith.constant 0 : i32
    %c0_i32_1 = arith.constant 0 : i32
    %c0_i32_2 = arith.constant 0 : i32
    return %c0_i32, %c0_i32_0, %c0_i32_1 : i32, i32, i32
  }
  func.func @transform_6(%arg0: i32) -> (i32, i32, i32) {
    %c0_i32 = arith.constant 0 : i32
    %c0_i32_0 = arith.constant 0 : i32
    %c0_i32_1 = arith.constant 0 : i32
    %c0_i32_2 = arith.constant 0 : i32
    return %c0_i32, %c0_i32_0, %c0_i32_1 : i32, i32, i32
  }
  func.func @transform_7(%arg0: i32) -> (i32, i32, i32) {
    %c0_i32 = arith.constant 0 : i32
    %c0_i32_0 = arith.constant 0 : i32
    %c0_i32_1 = arith.constant 0 : i32
    %c0_i32_2 = arith.constant 0 : i32
    return %c0_i32, %c0_i32_0, %c0_i32_1 : i32, i32, i32
  }
  func.func @transform_8(%arg0: i32) -> (i32, i32) {
    %c0_i32 = arith.constant 0 : i32
    %c0_i32_0 = arith.constant 0 : i32
    %c0_i32_1 = arith.constant 0 : i32
    return %c0_i32, %c0_i32_0 : i32, i32
  }
  func.func @transform_9(%arg0: i32) -> (i32, i32, i32) {
    %c0_i32 = arith.constant 0 : i32
    %c0_i32_0 = arith.constant 0 : i32
    %c0_i32_1 = arith.constant 0 : i32
    return %arg0, %c0_i32, %c0_i32_0 : i32, i32, i32
  }
}

</mosaic_0001>

<bundles_post_ra>
// kernel: _lambda_.1
= control target key start
LH: loop header
LB: loop body
LE: loop exit
PB: predicated region body
PF: predicated region fallthrough
CT: control target
= control target key end

     0   :  { %14 = vsyncpa [#allocation3], 0  ;;  %s2242_s0 = inlined_call_operand.vmem [shape: f32[2,16,32], index: 0, kind: input, shape index: {}]   ;;  %s2243_s1 = inlined_call_operand.vmem [shape: f32[2,1,16], index: 1, kind: input, shape index: {}]   ;;  %s2244_s2 = inlined_call_operand.vmem [shape: f32[8,128], index: 2, kind: input, shape index: {}]   ;;  %s2245_s3 = inlined_call_operand.vmem [shape: f32[2,8,128], index: 3, kind: input, shape index: {}]   ;;  %s2246_s4 = inlined_call_operand.vmem [shape: bf16[2,32,96], index: 4, kind: input, shape index: {}]   ;;  %s2247_s5 = inlined_call_operand.vmem [shape: bf16[2,32,32], index: 5, kind: input, shape index: {}]   ;;  %s2248_s6 = inlined_call_operand.vmem [shape: bf16[2,32,64], index: 6, kind: input, shape index: {}]   ;;  %s2249_s7 = inlined_call_operand.vmem [shape: bf16[2,64,32], index: 7, kind: input, shape index: {}]   ;;  %s2250_s8 = inlined_call_operand.vmem [shape: bf16[32,128], index: 8, kind: input, shape index: {}]   ;;  %s2251_s9 = inlined_call_operand.hbm [shape: f32[2,1,128], index: 9, kind: output, shape index: {}]  }
   0x1   :  { %16 = vsyncpa [#allocation3 + $0x1], 0  ;;  %s1893_s30 = smov 0   ;;  %s1895_s10 = smov 0  }
   0x2   :  { %s1897_s11 = smov 0   ;;  %s1899_s12 = smov 0  }
   0x3 LB: > { %s1914_s13 = sadd.s32 4294967295, %s1835_s12   ;;  %s1507_s14 = sadd.s32 4294967294, %s1835_s12   ;;  %s1835_s12 = sphi %s1899_s12, %s2261_s12   ;;  %s1831_s11 = sphi %s1897_s11, %s2260_s11   ;;  %s1827_s10 = sphi %s1895_s10, %s2259_s10   ;;  %s1823_s30 = sphi %s1893_s30, %s2258_s30  }
   0x4   : > { %s1918_s15 = sadd.s32 1, %s1835_s12   ;;  %s228_s16 = sadd.s32 1, %s1831_s11 }
   0x5   : > { %s225_s17 = ssub.s32 %s1835_s12, %s1918_s15  ;;  %p238_p0 = scmp.ne.s32.totalorder %s1831_s11, %s1827_s10 }
   0x6   : > { %p226_p1 = scmp.eq.s32.totalorder %s225_s17, 0  ;;  %p239_p2 = scmp.eq.s32.totalorder %s1914_s13, 1 }
   0x7   : > { %p244_p3 = scmp.ne.s32.totalorder %s1827_s10, %s1823_s30  ;;  %p245_p4 = scmp.eq.s32.totalorder %s1507_s14, 1 }
   0x8   : > { %s1929_s18 = scalar_select %p226_p1, %s1831_s11, %s228_s16  }
   0x9   : > { %p1931_p5 = por %p239_p2, %p238_p0  ;;  %p1935_p6 = por %p245_p4, %p244_p3 }
   0xa   : > { %p1510_p7 = scmp.ge.s32.totalorder %s1835_s12, 1  ;;  %p298_p8 = scmp.lt.s32.totalorder %s1835_s12, 3 }
   0xc   : > { %p299_p9 = pnand %p1510_p7, %p298_p8 }
   0xd   : > { %p336_p10 = scmp.lt.s32.totalorder (!%p299_p9), %s1914_s13, 1  ;;  %s1838_s27 = smov (!%p299_p9), 112  }
   0xe   : > { %302 = sbr.rel (%p299_p9) target bundleno = 4036 (0xfc4), region = 56  ;;  %s1840_s29 = smov (!%p299_p9), 80  }
   0xf   : > { %s334_s24 = sand.u32 (!%p299_p9), 1, %s1827_s10   ;;  %s1793_s14 = scalar_lea.hbm (!%p299_p9), %s2251_s9, 2 }
  0x13   : > { %s1943_s21 = scalar_select %p336_p10, %s1914_s13, 1  ;;  %vm349_vm0 = vcmask 261120   ;;  %v1837_v4 = vmov 32.0   ;;  %v1645_v21 = vld [vmem:[%s2246_s4 + $0x8] sm:$0xff]  ;;  %v1644_v24 = vld [vmem:[%s2246_s4] sm:$0xff]  ;;  %vm457_vm8 = vcmask 130048  }
  0x14   : > { %1712 = vrcp.f32 %v1837_v4  ;;  %441 = vmatpush.bf16.msra.mxu0 %v1645_v21  ;;  %v348_v37 = vld [vmem:[%s2244_s2] sm:$0xff] }
  0x15   : > { %s1643_s22 = sshll.u32 %s1943_s21, 4  ;;  %s343_s25 = scalar_lea.vmem %s2243_s1, %s1943_s21  ;;  %v401_v41 = vperm.slane %v348_v37, 0  ;;  %v404_v45 = vperm.slane %v348_v37, 1  ;;  %v1982_v58 = vld [vmem:[%s2245_s3] sm:$0xff] }
  0x16   : > { %s340_s28 = scalar_lea.vmem %s2242_s0, %s1643_s22  ;;  %v414_v59 = vperm.slane %v1982_v58, 0  ;;  %s1841_s21 = smov 64  }
  0x17   : > { %v345_v0 = vld [vmem:[%s340_s28] sm:$0xff]  ;;  %v346_v2 = vld [vmem:[%s340_s28 + $0x8] sm:$0xff]  ;;  %s1839_s28 = smov 96  }
  0x18   : > { %v350_v1 = vsel %vm349_vm0, %v345_v0, 0.0  ;;  %v353_v3 = vsel %vm349_vm0, %v346_v2, 0.0  ;;  %442 = vmatpush.bf16.msra.mxu0 %v1644_v24 }
  0x19   : > { %351 = vadd.xlane.f32.xlu0 %v350_v1 }
  0x1a   : > { %v1713_v5 = vpop.eup %1712 }
  0x1b   : > { %v357_v6 = vmul.f32 32.0, %v1713_v5  ;;  %vm361_vm1 = vweird.f32 %v1713_v5 }
  0x1d   : > { %v358_v7 = vsub.f32 1.0, %v357_v6 }
  0x1f   : > { %v359_v8 = vmul.f32 %v1713_v5, %v358_v7 }
  0x21   : > { %354 = vadd.xlane.f32.xlu0 %v353_v3  ;;  %v360_v9 = vadd.f32 %v1713_v5, %v359_v8 }
  0x23   : > { %v1955_v10 = vsel %vm361_vm1, %v1713_v5, %v360_v9  ;;  %v2003_v5 = vld [vmem:[%s343_s25] ss:$0 sm:$0xff]  ;;  %s2252_s25 = smov 48  }
  0x8c   : > { %v352_v11 = vpop.xlane.xlu0 %351 }
  0x8d   : > { %v363_v12 = vmul.f32 %v1955_v10, %v352_v11 }
  0x8f   : > { %v365_v13 = vsub.f32 %v345_v0, %v363_v12 }
  0x91   : > { %v367_v14 = vmul.f32 %v365_v13, %v365_v13 }
  0x93   : > { %v369_v15 = vsel %vm349_vm0, %v367_v14, 0.0 }
  0x94   : > { %370 = vadd.xlane.f32.xlu1 %v369_v15  ;;  %v355_v16 = vpop.xlane.xlu0 %354 }
  0x95   : > { %v364_v17 = vmul.f32 %v1955_v10, %v355_v16 }
  0x97   : > { %v366_v18 = vsub.f32 %v346_v2, %v364_v17 }
  0x99   : > { %v368_v19 = vmul.f32 %v366_v18, %v366_v18 }
  0x9b   : > { %v372_v20 = vsel %vm349_vm0, %v368_v19, 0.0 }
  0x9c   : > { %373 = vadd.xlane.f32.xlu1 %v372_v20 }
 0x107   : > { %v371_v22 = vpop.xlane.xlu1 %370 }
 0x108   : > { %v375_v23 = vmul.f32 %v371_v22, %v1955_v10 }
 0x10a   : > { %v377_v25 = vadd.f32 1e-12, %v375_v23 }
 0x10c   : > { %1714 = vrsqrt.f32 %v377_v25  ;;  %vm385_vm3 = vweird.f32 %v377_v25 }
 0x10f   : > { %v374_v26 = vpop.xlane.xlu1 %373 }
 0x110   : > { %v376_v27 = vmul.f32 %v374_v26, %v1955_v10 }
 0x112   : > { %v1715_v28 = vpop.eup %1714  ;;  %v378_v29 = vadd.f32 1e-12, %v376_v27 }
 0x113   : > { %v380_v30 = vmul.f32 %v1715_v28, %v377_v25  ;;  %vm386_vm2 = vweird.f32 %v1715_v28 }
 0x114   : > { %1716 = vrsqrt.f32 %v378_v29  ;;  %vm387_vm4 = vmor %vm385_vm3, %vm386_vm2  ;;  %vm395_vm6 = vweird.f32 %v378_v29 }
 0x115   : > { %v381_v31 = vmul.f32 %v1715_v28, %v380_v30 }
 0x117   : > { %v382_v32 = vmul.f32 0.5, %v381_v31 }
 0x119   : > { %v383_v33 = vsub.f32 1.5, %v382_v32 }
 0x11a   : > { %v1717_v34 = vpop.eup %1716 }
 0x11b   : > { %v384_v35 = vmul.f32 %v1715_v28, %v383_v33  ;;  %v390_v36 = vmul.f32 %v1717_v34, %v378_v29  ;;  %vm396_vm5 = vweird.f32 %v1717_v34 }
 0x11c   : > { %vm397_vm7 = vmor %vm395_vm6, %vm396_vm5 }
 0x11d   : > { %v388_v38 = vsel %vm387_vm4, %v1715_v28, %v384_v35  ;;  %v391_v39 = vmul.f32 %v1717_v34, %v390_v36 }
 0x11e   : > { %v399_v40 = vmul.f32 %v388_v38, %v365_v13 }
 0x11f   : > { %v392_v42 = vmul.f32 0.5, %v391_v39 }
 0x120   : > { %v402_v44 = vmul.f32 %v401_v41, %v399_v40 }
 0x121   : > { %v393_v43 = vsub.f32 1.5, %v392_v42 }
 0x122   : > { %v405_v49 = vadd.f32 %v404_v45, %v402_v44 }
 0x123   : > { %v394_v46 = vmul.f32 %v1717_v34, %v393_v43 }
 0x124   : > { %v1972_v52 = vpack.c.bf16 %v405_v49, %v405_v49 }
 0x125   : > { %v398_v47 = vsel %vm397_vm7, %v1717_v34, %v394_v46 }
 0x126   : > { %v400_v48 = vmul.f32 %v398_v47, %v366_v18  ;;  %v417_v54 = vunpack.c.l.b16 %v1972_v52 }
 0x128   : > { %v403_v50 = vmul.f32 %v401_v41, %v400_v48 }
 0x12a   : > { %v406_v51 = vadd.f32 %v404_v45, %v403_v50 }
 0x12c   : > { %v1974_v53 = vpack.c.bf16 %v406_v51, %v406_v51 }
 0x12e   : > { %v418_v55 = vunpack.c.l.b16 %v1974_v53 }
 0x130   : > { %v419_v56 = vpack.c.b16 %v418_v55, %v417_v54 }
 0x132   : > { %1521 = vmatmul.msk.bf16.vlgmr.msra.gmra.mxu0 %vm349_vm0, %v419_v56 }
 0x1af   : > { %v444_v57 = vpop.f32.mrf.mxu0 }
 0x1b0   : > { %v445_v61 = vadd.f32 %v444_v57, %v414_v59 }
 0x1b7   : > { %v446_v60 = vpop.f32.mrf.mxu0 }
 0x1b8   : > { %v447_v62 = vadd.f32 %v446_v60, %v414_v59 }
 0x1ba   : > { %v1985_v63 = vpack.c.bf16 %v447_v62, %v445_v61 }
 0x1bc   : > { %555 = vrot.lane.b32.xlu0 %v1985_v63, %s1838_s27  ;;  %455 = vrot.lane.b32.xlu2 %v1985_v63, %s1839_s28 }
 0x1c4   : > { %557 = vrot.lane.b32.xlu2 %v1985_v63, %s1840_s29 }
 0x216   : > { %v456_v0 = vpop.permute.xlu2 %455 }
 0x217   : > { %v462_v1 = vsel %vm457_vm8, %v456_v0, 0 }
 0x218   : > { %471 = vmatpush.bf16.xpose.msra.mxu1 %v462_v1 }
 0x21e   : > { %v558_v2 = vpop.permute.xlu2 %557 }
 0x21f   : > { %1522 = vmatmul.msk.bf16.vlgmr.msra.gmra.mxu1 %vm457_vm8, %v1985_v63  ;;  %v563_v3 = vsel %vm457_vm8, %v558_v2, 0 }
 0x220   : > { %572 = vmatpush.bf16.xpose.msra.mxu3 %v563_v3 }
 0x22e   : > { %v556_v4 = vpop.permute.xlu0 %555 }
 0x22f   : > { %1524 = vmatmul.msk.bf16.vlgmr.msra.gmra.mxu3 %vm457_vm8, %v556_v4 }
 0x29c   : > { %v473_v6 = vpop.f32.mrf.mxu1 }
 0x29d   : > { %v478_v7 = vmul.f32 0.25, %v473_v6 }
 0x29f   : > { %v483_v8 = vadd.f32 %v2003_v5, %v478_v7 }
 0x2a1   : > { %v485_v9 = vsel %vm457_vm8, %v483_v8, -inf }
 0x2a2   : > { %486 = vmax.xlane.f32.xlu1 %v485_v9 }
 0x2a4   : > { %v475_v11 = vpop.f32.mrf.mxu1 }
 0x2a5   : > { %v479_v12 = vmul.f32 0.25, %v475_v11 }
 0x2a7   : > { %v484_v13 = vadd.f32 %v2003_v5, %v479_v12 }
 0x2a9   : > { %v488_v14 = vsel %vm457_vm8, %v484_v13, -inf }
 0x2aa   : > { %489 = vmax.xlane.f32.xlu2 %v488_v14 }
 0x2b2   : > { %v574_v15 = vpop.f32.mrf.mxu3 }
 0x2b3   : > { %v579_v16 = vmul.f32 0.25, %v574_v15 }
 0x2b5   : > { %v581_v17 = vadd.f32 %v2003_v5, %v579_v16 }
 0x2b7   : > { %v583_v18 = vsel %vm457_vm8, %v581_v17, -inf }
 0x2b8   : > { %584 = vmax.xlane.f32.xlu1 %v583_v18 }
 0x2ba   : > { %v576_v19 = vpop.f32.mrf.mxu3 }
 0x2bb   : > { %v580_v20 = vmul.f32 0.25, %v576_v19 }
 0x2bd   : > { %v582_v21 = vadd.f32 %v2003_v5, %v580_v20 }
 0x2bf   : > { %v586_v22 = vsel %vm457_vm8, %v582_v21, -inf }
 0x2c0   : > { %587 = vmax.xlane.f32.xlu1 %v586_v22 }
 0x2c2   : > { %534 = vrot.lane.b32.xlu2 %v1985_v63, %s1841_s21 }
 0x315   : > { %v487_v23 = vpop.xlane.xlu1 %486 }
 0x316   : > { %v491_v24 = vsub.f32 %v483_v8, %v487_v23 }
 0x318   : > { %v493_v25 = vmul.f32 1.442695, %v491_v24 }
 0x31a   : > { %1718 = vpow2.f32 %v493_v25 }
 0x31d   : > { %v490_v26 = vpop.xlane.xlu2 %489 }
 0x31e   : > { %v492_v32 = vsub.f32 %v484_v13, %v490_v26 }
 0x320   : > { %v2015_v27 = vpop.eup %1718  ;;  %v495_v34 = vmul.f32 1.442695, %v492_v32 }
 0x321   : > { %v497_v28 = vsel %vm457_vm8, %v2015_v27, 0.0 }
 0x322   : > { %498 = vadd.xlane.f32.xlu0 %v497_v28 }
 0x325   : > { %v535_v29 = vpop.permute.xlu2 %534 }
 0x326   : > { %547 = vmatpush.bf16.msra.mxu2 %v535_v29 }
 0x32b   : > { %v585_v30 = vpop.xlane.xlu1 %584 }
 0x32c   : > { %v589_v31 = vsub.f32 %v581_v17, %v585_v30 }
 0x32e   : > { %v591_v33 = vmul.f32 1.442695, %v589_v31 }
 0x330   : > { %1720 = vpow2.f32 %v591_v33 }
 0x331   : > { %1722 = vpow2.f32 %v495_v34 }
 0x333   : > { %v588_v35 = vpop.xlane.xlu1 %587 }
 0x334   : > { %v590_v37 = vsub.f32 %v582_v21, %v588_v35 }
 0x336   : > { %v2019_v36 = vpop.eup %1720  ;;  %v593_v39 = vmul.f32 1.442695, %v590_v37 }
 0x337   : > { %v595_v38 = vsel %vm457_vm8, %v2019_v36, 0.0  ;;  %v1723_v40 = vpop.eup %1722 }
 0x338   : > { %596 = vadd.xlane.f32.xlu1 %v595_v38  ;;  %1724 = vpow2.f32 %v593_v39  ;;  %v500_v41 = vsel %vm457_vm8, %v1723_v40, 0.0  ;;  %v1646_v38 = vld [vmem:[%s2247_s5] sm:$0xff]  ;;  %v1647_v39 = vld [vmem:[%s2247_s5 + $0x8] sm:$0xff] }
 0x339   : > { %692 = vmatpush.bf16.msrb.mxu1 %v1646_v38  ;;  %669 = vmatpush.bf16.msrb.mxu0 %v1647_v39 }
 0x33e   : > { %v2024_v42 = vpop.eup %1724 }
 0x33f   : > { %v598_v43 = vsel %vm457_vm8, %v2024_v42, 0.0 }
 0x340   : > { %501 = vadd.xlane.f32.xlu1 %v500_v41 }
 0x348   : > { %599 = vadd.xlane.f32.xlu1 %v598_v43 }
 0x361   : > { %632 = vrot.lane.b32.xlu1 %v1985_v63, %s2252_s25  ;;  %s1431_s25 = scalar_lea.sflag [#allocation3], %s334_s24 }
 0x395   : > { %v499_v44 = vpop.xlane.xlu0 %498 }
 0x396   : > { %1726 = vrcp.f32 %v499_v44  ;;  %vm508_vm10 = vweird.f32 %v499_v44  ;;  %v514_v59 = vand.u32 2147483648, %v499_v44  ;;  %v512_v61 = vand.u32 2147483647, %v499_v44 }
 0x398   : > { %v515_v4 = vor.u32 1.1754944e-38, %v514_v59  ;;  %vm513_vm13 = vcmp.eq.f32.partialorder %v512_v61, 8.507059e+37  ;;  %v700_v59 = vunpack.c.l.bf16 %v1974_v53 }
 0x39c   : > { %v1727_v45 = vpop.eup %1726 }
 0x39d   : > { %v504_v47 = vmul.f32 %v1727_v45, %v499_v44  ;;  %vm509_vm9 = vweird.f32 %v1727_v45 }
 0x39e   : > { %vm2033_vm11 = vmor %vm508_vm10, %vm509_vm9 }
 0x39f   : > { %v505_v48 = vsub.f32 1.0, %v504_v47 }
 0x3a1   : > { %v506_v50 = vmul.f32 %v1727_v45, %v505_v48  ;;  %v699_v48 = vunpack.c.l.bf16 %v1972_v52 }
 0x3a3   : > { %v507_v54 = vadd.f32 %v1727_v45, %v506_v50 }
 0x3a5   : > { %v511_v0 = vsel %vm2033_vm11, %v1727_v45, %v507_v54 }
 0x3a6   : > { %v516_v9 = vsel %vm513_vm13, %v515_v4, %v511_v0 }
 0x3a7   : > { %v517_v16 = vmul.f32 %v2015_v27, %v516_v9 }
 0x3ab   : > { %v2030_v46 = vpop.xlane.xlu1 %596 }
 0x3ac   : > { %v612_v25 = vand.u32 2147483648, %v2030_v46  ;;  %vm606_vm6 = vweird.f32 %v2030_v46  ;;  %v610_v26 = vand.u32 2147483647, %v2030_v46 }
 0x3ae   : > { %v613_v30 = vor.u32 1.1754944e-38, %v612_v25  ;;  %vm611_vm10 = vcmp.eq.f32.partialorder %v610_v26, 8.507059e+37 }
 0x3b3   : > { %v502_v49 = vpop.xlane.xlu1 %501 }
 0x3b4   : > { %1728 = vrcp.f32 %v502_v49  ;;  %v529_v63 = vand.u32 2147483648, %v502_v49  ;;  %v527_v3 = vand.u32 2147483647, %v502_v49  ;;  %vm523_vm14 = vweird.f32 %v502_v49 }
 0x3b5   : > { %1730 = vrcp.f32 %v2030_v46 }
 0x3b6   : > { %v530_v8 = vor.u32 1.1754944e-38, %v529_v63  ;;  %vm528_vm1 = vcmp.eq.f32.partialorder %v527_v3, 8.507059e+37 }
 0x3ba   : > { %v1729_v51 = vpop.eup %1728 }
 0x3bb   : > { %v519_v55 = vmul.f32 %v1729_v51, %v502_v49  ;;  %v600_v56 = vpop.xlane.xlu1 %599  ;;  %v1731_v57 = vpop.eup %1730  ;;  %vm524_vm12 = vweird.f32 %v1729_v51  ;;  %v703_v49 = vperm.slane %v1982_v58, 1 }
 0x3bc   : > { %1732 = vrcp.f32 %v600_v56  ;;  %v602_v1 = vmul.f32 %v1731_v57, %v2030_v46  ;;  %vm525_vm15 = vmor %vm523_vm14, %vm524_vm12  ;;  %v627_v22 = vand.u32 2147483648, %v600_v56  ;;  %vm607_vm3 = vweird.f32 %v1731_v57 }
 0x3bd   : > { %v520_v62 = vsub.f32 1.0, %v519_v55  ;;  %vm621_vm4 = vweird.f32 %v600_v56  ;;  %v625_v24 = vand.u32 2147483647, %v600_v56  ;;  %vm608_vm7 = vmor %vm606_vm6, %vm607_vm3 }
 0x3be   : > { %v603_v11 = vsub.f32 1.0, %v602_v1  ;;  %v628_v28 = vor.u32 1.1754944e-38, %v627_v22 }
 0x3bf   : > { %v521_v2 = vmul.f32 %v1729_v51, %v520_v62  ;;  %vm626_vm9 = vcmp.eq.f32.partialorder %v625_v24, 8.507059e+37 }
 0x3c0   : > { %v604_v18 = vmul.f32 %v1731_v57, %v603_v11 }
 0x3c1   : > { %v522_v6 = vadd.f32 %v1729_v51, %v521_v2 }
 0x3c2   : > { %v1733_v7 = vpop.eup %1732  ;;  %v605_v23 = vadd.f32 %v1731_v57, %v604_v18 }
 0x3c3   : > { %v617_v12 = vmul.f32 %v1733_v7, %v600_v56  ;;  %v526_v13 = vsel %vm525_vm15, %v1729_v51, %v522_v6  ;;  %vm622_vm2 = vweird.f32 %v1733_v7 }
 0x3c4   : > { %v531_v14 = vsel %vm528_vm1, %v530_v8, %v526_v13  ;;  %vm623_vm5 = vmor %vm621_vm4, %vm622_vm2  ;;  %v609_v29 = vsel %vm608_vm7, %v1731_v57, %v605_v23  ;;  %v1649_v8 = vld [vmem:[%s2248_s6 + $0x8] sm:$0xff]  ;;  %vm843_vm2 = vcmask 523264  }
 0x3c5   : > { %v618_v15 = vsub.f32 1.0, %v617_v12  ;;  %v532_v17 = vmul.f32 %v1723_v40, %v531_v14  ;;  %v614_v32 = vsel %vm611_vm10, %v613_v30, %v609_v29  ;;  %783 = vmatpush.bf16.msrb.mxu3 %v1649_v8  ;;  %v1648_v12 = vld [vmem:[%s2248_s6] sm:$0xff]  ;;  %v750_v30 = vperm.slane %v1982_v58, 2 }
 0x3c6   : > { %v615_v35 = vmul.f32 %v2019_v36, %v614_v32 }
 0x3c7   : > { %v619_v19 = vmul.f32 %v1733_v7, %v618_v15  ;;  %v533_v20 = vpack.c.bf16 %v532_v17, %v517_v16 }
 0x3c9   : > { %v620_v21 = vadd.f32 %v1733_v7, %v619_v19  ;;  %1523 = vmatmul.msk.bf16.vlgmr.msra.gmra.mxu2 %vm457_vm8, %v533_v20  ;;  %784 = vmatpush.bf16.msrb.mxu3 %v1648_v12 }
 0x3cb   : > { %v624_v27 = vsel %vm623_vm5, %v1733_v7, %v620_v21 }
 0x3cc   : > { %v629_v31 = vsel %vm626_vm9, %v628_v28, %v624_v27 }
 0x3cd   : > { %v630_v34 = vmul.f32 %v2024_v42, %v629_v31 }
 0x3cf   : > { %v631_v37 = vpack.c.bf16 %v630_v34, %v615_v35  ;;  %v753_v35 = vperm.slane %v1982_v58, 3 }
 0x3d3   : > { %v633_v33 = vpop.permute.xlu1 %632 }
 0x3d4   : > { %645 = vmatpush.bf16.msrb.mxu2 %v633_v33 }
 0x3d9   : > { %1525 = vmatmul.msk.bf16.vlgmr.msrb.gmra.mxu2 %vm457_vm8, %v631_v37 }
 0x44c   : > { %v549_v40 = vpop.f32.mrf.mxu2 }
 0x454   : > { %v551_v41 = vpop.f32.mrf.mxu2 }
 0x455   : > { %v554_v43 = vpack.c.bf16 %v551_v41, %v549_v40  ;;  %v1653_v41 = vld [vmem:[%s2249_s7 + $0x18] sm:$0xff] }
 0x456   : > { %851 = vmatpush.bf16.msra.mxu2 %v1653_v41 }
 0x457   : > { %1535 = vmatmul.msk.bf16.vlgmr.msrb.gmra.mxu1 %vm457_vm8, %v554_v43  ;;  %v1652_v43 = vld [vmem:[%s2249_s7 + $0x10] sm:$0xff] }
 0x45a   : > { %852 = vmatpush.bf16.msra.mxu2 %v1652_v43 }
 0x45c   : > { %v647_v42 = vpop.f32.mrf.mxu2 }
 0x464   : > { %v649_v36 = vpop.f32.mrf.mxu2 }
 0x465   : > { %v652_v44 = vpack.c.bf16 %v649_v36, %v647_v42  ;;  %v1651_v42 = vld [vmem:[%s2249_s7 + $0x8] sm:$0xff]  ;;  %v1650_v36 = vld [vmem:[%s2249_s7] sm:$0xff] }
 0x466   : > { %853 = vmatpush.bf16.msra.mxu2 %v1651_v42 }
 0x467   : > { %1530 = vmatmul.msk.bf16.vlgmr.msrb.gmra.mxu0 %vm457_vm8, %v652_v44  ;;  %v761_v44 = vperm.slane %v1982_v58, 4 }
 0x46a   : > { %854 = vmatpush.bf16.msra.mxu2 %v1650_v36 }
 0x4d4   : > { %v694_v45 = vpop.f32.mrf.mxu1 }
 0x4dc   : > { %v696_v55 = vpop.f32.mrf.mxu1 }
 0x4e4   : > { %v671_v46 = vpop.f32.mrf.mxu0 }
 0x4e5   : > { %v695_v47 = vadd.f32 %v694_v45, %v671_v46 }
 0x4e7   : > { %v701_v50 = vadd.f32 %v699_v48, %v695_v47 }
 0x4e9   : > { %v704_v51 = vadd.f32 %v703_v49, %v701_v50 }
 0x4eb   : > { %v706_v54 = vsel %vm349_vm0, %v704_v51, 0.0 }
 0x4ec   : > { %v673_v56 = vpop.f32.mrf.mxu0  ;;  %707 = vadd.xlane.f32.xlu0 %v706_v54 }
 0x4ed   : > { %v697_v57 = vadd.f32 %v696_v55, %v673_v56 }
 0x4ef   : > { %v702_v60 = vadd.f32 %v700_v59, %v697_v57 }
 0x4f1   : > { %v705_v61 = vadd.f32 %v703_v49, %v702_v60 }
 0x4f3   : > { %v709_v62 = vsel %vm349_vm0, %v705_v61, 0.0 }
 0x4f4   : > { %710 = vadd.xlane.f32.xlu2 %v709_v62 }
 0x55f   : > { %v708_v63 = vpop.xlane.xlu0 %707 }
 0x560   : > { %v712_v52 = vmul.f32 %v708_v63, %v1955_v10 }
 0x562   : > { %v714_v0 = vsub.f32 %v704_v51, %v712_v52 }
 0x564   : > { %v716_v1 = vmul.f32 %v714_v0, %v714_v0 }
 0x566   : > { %v718_v2 = vsel %vm349_vm0, %v716_v1, 0.0 }
 0x567   : > { %v711_v3 = vpop.xlane.xlu2 %710  ;;  %719 = vadd.xlane.f32.xlu0 %v718_v2 }
 0x568   : > { %v713_v4 = vmul.f32 %v711_v3, %v1955_v10 }
 0x56a   : > { %v715_v6 = vsub.f32 %v705_v61, %v713_v4 }
 0x56c   : > { %v717_v7 = vmul.f32 %v715_v6, %v715_v6 }
 0x56e   : > { %v721_v53 = vsel %vm349_vm0, %v717_v7, 0.0  ;;  %v818_v7 = vperm.slane %v1982_v58, 5 }
 0x56f   : > { %722 = vadd.xlane.f32.xlu1 %v721_v53 }
 0x5da   : > { %v720_v9 = vpop.xlane.xlu0 %719 }
 0x5db   : > { %v724_v11 = vmul.f32 %v720_v9, %v1955_v10 }
 0x5dd   : > { %v726_v13 = vadd.f32 1e-12, %v724_v11 }
 0x5df   : > { %1734 = vrsqrt.f32 %v726_v13  ;;  %vm734_vm12 = vweird.f32 %v726_v13 }
 0x5e2   : > { %v723_v14 = vpop.xlane.xlu1 %722 }
 0x5e3   : > { %v725_v15 = vmul.f32 %v723_v14, %v1955_v10 }
 0x5e5   : > { %v1735_v16 = vpop.eup %1734  ;;  %v727_v17 = vadd.f32 1e-12, %v725_v15 }
 0x5e6   : > { %v729_v18 = vmul.f32 %v1735_v16, %v726_v13  ;;  %vm735_vm11 = vweird.f32 %v1735_v16 }
 0x5e7   : > { %1736 = vrsqrt.f32 %v727_v17  ;;  %vm736_vm13 = vmor %vm734_vm12, %vm735_vm11  ;;  %vm744_vm15 = vweird.f32 %v727_v17 }
 0x5e8   : > { %v730_v19 = vmul.f32 %v1735_v16, %v729_v18 }
 0x5ea   : > { %v731_v20 = vmul.f32 0.5, %v730_v19 }
 0x5ec   : > { %v732_v21 = vsub.f32 1.5, %v731_v20 }
 0x5ed   : > { %v1737_v22 = vpop.eup %1736 }
 0x5ee   : > { %v733_v23 = vmul.f32 %v1735_v16, %v732_v21  ;;  %v739_v24 = vmul.f32 %v1737_v22, %v727_v17  ;;  %vm745_vm14 = vweird.f32 %v1737_v22 }
 0x5ef   : > { %vm746_vm1 = vmor %vm744_vm15, %vm745_vm14 }
 0x5f0   : > { %v740_v25 = vmul.f32 %v1737_v22, %v739_v24  ;;  %v737_v26 = vsel %vm736_vm13, %v1735_v16, %v733_v23 }
 0x5f1   : > { %v748_v29 = vmul.f32 %v737_v26, %v714_v0 }
 0x5f2   : > { %v741_v27 = vmul.f32 0.5, %v740_v25 }
 0x5f3   : > { %v751_v34 = vmul.f32 %v750_v30, %v748_v29  ;;  %v1655_v29 = vld [vmem:[%s2246_s4 + $0x18] sm:$0xff] }
 0x5f4   : > { %v742_v28 = vsub.f32 1.5, %v741_v27  ;;  %949 = vmatpush.bf16.msra.mxu0 %v1655_v29 }
 0x5f5   : > { %v754_v38 = vadd.f32 %v753_v35, %v751_v34 }
 0x5f6   : > { %v743_v31 = vmul.f32 %v1737_v22, %v742_v28 }
 0x5f8   : > { %v747_v32 = vsel %vm746_vm1, %v1737_v22, %v743_v31 }
 0x5f9   : > { %v749_v33 = vmul.f32 %v747_v32, %v715_v6 }
 0x5fb   : > { %v752_v37 = vmul.f32 %v750_v30, %v749_v33  ;;  %v1654_v30 = vld [vmem:[%s2246_s4 + $0x10] sm:$0xff] }
 0x5fc   : > { %950 = vmatpush.bf16.msra.mxu0 %v1654_v30 }
 0x5fd   : > { %v755_v39 = vadd.f32 %v753_v35, %v752_v37 }
 0x5ff   : > { %v756_v40 = vpack.c.bf16 %v755_v39, %v754_v38 }
 0x601   : > { %1544 = vmatmul.msk.bf16.vlgmr.msrb.gmra.mxu3 %vm349_vm0, %v756_v40 }
 0x684   : > { %v786_v45 = vpop.f32.mrf.mxu3 }
 0x685   : > { %v787_v46 = vadd.f32 %v786_v45, %v761_v44 }
 0x687   : > { %v793_v47 = vmul.f32 0.044715, %v787_v46  ;;  %v791_v0 = vmul.f32 0.5, %v787_v46 }
 0x689   : > { %v795_v48 = vmul.f32 %v793_v47, %v787_v46 }
 0x68b   : > { %v797_v49 = vmul.f32 %v795_v48, %v787_v46  ;;  %v910_v48 = vperm.slane %v1982_v58, 7 }
 0x68c   : > { %v788_v50 = vpop.f32.mrf.mxu3 }
 0x68d   : > { %v799_v51 = vadd.f32 %v797_v49, %v787_v46  ;;  %v789_v54 = vadd.f32 %v788_v50, %v761_v44  ;;  %v907_v44 = vperm.slane %v1982_v58, 6 }
 0x68f   : > { %v794_v55 = vmul.f32 0.044715, %v789_v54  ;;  %v801_v56 = vmul.f32 0.7978846, %v799_v51  ;;  %v792_v1 = vmul.f32 0.5, %v789_v54 }
 0x691   : > { %v796_v57 = vmul.f32 %v794_v55, %v789_v54  ;;  %1738 = vtanh.f32 %v801_v56 }
 0x693   : > { %v798_v59 = vmul.f32 %v796_v57, %v789_v54 }
 0x695   : > { %v800_v60 = vadd.f32 %v798_v59, %v789_v54 }
 0x697   : > { %v802_v61 = vmul.f32 0.7978846, %v800_v60  ;;  %v1739_v62 = vpop.eup %1738 }
 0x698   : > { %v805_v63 = vadd.f32 1.0, %v1739_v62 }
 0x699   : > { %1740 = vtanh.f32 %v802_v61 }
 0x69a   : > { %v807_v3 = vmul.f32 %v805_v63, %v791_v0 }
 0x69f   : > { %v1741_v52 = vpop.eup %1740 }
 0x6a0   : > { %v806_v2 = vadd.f32 1.0, %v1741_v52  ;;  %v2117_v52 = vld [vmem:[%s2245_s3 + $0x8] sm:$0xff] }
 0x6a1   : > { %v922_v0 = vperm.slane %v2117_v52, 0 }
 0x6a2   : > { %v808_v4 = vmul.f32 %v806_v2, %v792_v1 }
 0x6a4   : > { %v809_v6 = vpack.c.bf16 %v808_v4, %v807_v3 }
 0x6a6   : > { %1561 = vmatmul.msk.bf16.vlgmr.msra.gmra.mxu2 %vm843_vm2, %v809_v6 }
 0x729   : > { %v856_v53 = vpop.f32.mrf.mxu2 }
 0x72a   : > { %v857_v8 = vadd.f32 %v856_v53, %v818_v7 }
 0x72c   : > { %v861_v9 = vadd.f32 %v857_v8, %v754_v38 }
 0x72e   : > { %v863_v11 = vsel %vm349_vm0, %v861_v9, 0.0 }
 0x72f   : > { %864 = vadd.xlane.f32.xlu0 %v863_v11 }
 0x731   : > { %v858_v12 = vpop.f32.mrf.mxu2 }
 0x732   : > { %v859_v13 = vadd.f32 %v858_v12, %v818_v7 }
 0x734   : > { %v862_v14 = vadd.f32 %v859_v13, %v755_v39 }
 0x736   : > { %v866_v15 = vsel %vm349_vm0, %v862_v14, 0.0 }
 0x737   : > { %867 = vadd.xlane.f32.xlu0 %v866_v15 }
 0x7a2   : > { %v865_v16 = vpop.xlane.xlu0 %864 }
 0x7a3   : > { %v869_v17 = vmul.f32 %v865_v16, %v1955_v10 }
 0x7a5   : > { %v871_v18 = vsub.f32 %v861_v9, %v869_v17 }
 0x7a7   : > { %v873_v19 = vmul.f32 %v871_v18, %v871_v18 }
 0x7a9   : > { %v875_v20 = vsel %vm349_vm0, %v873_v19, 0.0 }
 0x7aa   : > { %876 = vadd.xlane.f32.xlu0 %v875_v20  ;;  %v868_v21 = vpop.xlane.xlu0 %867 }
 0x7ab   : > { %v870_v22 = vmul.f32 %v868_v21, %v1955_v10 }
 0x7ad   : > { %v872_v23 = vsub.f32 %v862_v14, %v870_v22 }
 0x7af   : > { %v874_v24 = vmul.f32 %v872_v23, %v872_v23 }
 0x7b1   : > { %v878_v25 = vsel %vm349_vm0, %v874_v24, 0.0 }
 0x7b2   : > { %879 = vadd.xlane.f32.xlu0 %v878_v25 }
 0x81d   : > { %v877_v26 = vpop.xlane.xlu0 %876 }
 0x81e   : > { %v881_v27 = vmul.f32 %v877_v26, %v1955_v10 }
 0x820   : > { %v883_v28 = vadd.f32 1e-12, %v881_v27 }
 0x822   : > { %1742 = vrsqrt.f32 %v883_v28  ;;  %vm891_vm4 = vweird.f32 %v883_v28 }
 0x825   : > { %v880_v31 = vpop.xlane.xlu0 %879 }
 0x826   : > { %v882_v32 = vmul.f32 %v880_v31, %v1955_v10 }
 0x828   : > { %v1743_v33 = vpop.eup %1742  ;;  %v884_v34 = vadd.f32 1e-12, %v882_v32 }
 0x829   : > { %v886_v35 = vmul.f32 %v1743_v33, %v883_v28  ;;  %vm892_vm3 = vweird.f32 %v1743_v33 }
 0x82a   : > { %1744 = vrsqrt.f32 %v884_v34  ;;  %vm893_vm5 = vmor %vm891_vm4, %vm892_vm3  ;;  %vm901_vm7 = vweird.f32 %v884_v34 }
 0x82b   : > { %v887_v37 = vmul.f32 %v1743_v33, %v886_v35 }
 0x82d   : > { %v888_v38 = vmul.f32 0.5, %v887_v37 }
 0x82f   : > { %v889_v39 = vsub.f32 1.5, %v888_v38 }
 0x830   : > { %v1745_v40 = vpop.eup %1744 }
 0x831   : > { %v890_v41 = vmul.f32 %v1743_v33, %v889_v39  ;;  %v896_v43 = vmul.f32 %v1745_v40, %v884_v34  ;;  %vm902_vm6 = vweird.f32 %v1745_v40 }
 0x832   : > { %vm903_vm9 = vmor %vm901_vm7, %vm902_vm6 }
 0x833   : > { %v894_v42 = vsel %vm893_vm5, %v1743_v33, %v890_v41  ;;  %v897_v36 = vmul.f32 %v1745_v40, %v896_v43 }
 0x834   : > { %v905_v45 = vmul.f32 %v894_v42, %v871_v18 }
 0x835   : > { %v898_v46 = vmul.f32 0.5, %v897_v36 }
 0x836   : > { %v908_v49 = vmul.f32 %v907_v44, %v905_v45 }
 0x837   : > { %v899_v47 = vsub.f32 1.5, %v898_v46 }
 0x838   : > { %v911_v54 = vadd.f32 %v910_v48, %v908_v49 }
 0x839   : > { %v900_v50 = vmul.f32 %v1745_v40, %v899_v47 }
 0x83a   : > { %v2107_v57 = vpack.c.bf16 %v911_v54, %v911_v54 }
 0x83b   : > { %v904_v51 = vsel %vm903_vm9, %v1745_v40, %v900_v50 }
 0x83c   : > { %v906_v55 = vmul.f32 %v904_v51, %v872_v23  ;;  %v925_v61 = vunpack.c.l.b16 %v2107_v57 }
 0x83e   : > { %v909_v56 = vmul.f32 %v907_v44, %v906_v55 }
 0x840   : > { %v912_v59 = vadd.f32 %v910_v48, %v909_v56 }
 0x842   : > { %v2109_v60 = vpack.c.bf16 %v912_v59, %v912_v59 }
 0x844   : > { %v926_v62 = vunpack.c.l.b16 %v2109_v60 }
 0x846   : > { %v927_v63 = vpack.c.b16 %v926_v62, %v925_v61 }
 0x848   : > { %1575 = vmatmul.msk.bf16.vlgmr.msra.gmra.mxu0 %vm349_vm0, %v927_v63 }
 0x8c5   : > { %v952_v58 = vpop.f32.mrf.mxu0 }
 0x8c6   : > { %v953_v2 = vadd.f32 %v952_v58, %v922_v0 }
 0x8cd   : > { %v954_v1 = vpop.f32.mrf.mxu0 }
 0x8ce   : > { %v955_v3 = vadd.f32 %v954_v1, %v922_v0 }
 0x8d0   : > { %v962_v4 = vpack.c.bf16 %v955_v3, %v953_v2 }
 0x8d2   : > { %1060 = vrot.lane.b32.xlu1 %v962_v4, %s1838_s27  ;;  %1062 = vrot.lane.b32.xlu0 %v962_v4, %s1840_s29  ;;  %s2257_s27 = smov 48  }
 0x8d3   : > { %964 = vrot.lane.b32.xlu2 %v962_v4, %s1839_s28 }
 0x92d   : > { %v965_v6 = vpop.permute.xlu2 %964 }
 0x92e   : > { %v970_v7 = vsel %vm457_vm8, %v965_v6, 0 }
 0x92f   : > { %979 = vmatpush.bf16.xpose.msra.mxu1 %v970_v7 }
 0x936   : > { %1580 = vmatmul.msk.bf16.vlgmr.msra.gmra.mxu1 %vm457_vm8, %v962_v4 }
 0x944   : > { %v1063_v53 = vpop.permute.xlu0 %1062  ;;  %v1061_v9 = vpop.permute.xlu1 %1060 }
 0x945   : > { %v1068_v8 = vsel %vm457_vm8, %v1063_v53, 0 }
 0x946   : > { %1077 = vmatpush.bf16.xpose.msrb.mxu2 %v1068_v8 }
 0x94d   : > { %1582 = vmatmul.msk.bf16.vlgmr.msrb.gmra.mxu2 %vm457_vm8, %v1061_v9 }
 0x9b3   : > { %v981_v11 = vpop.f32.mrf.mxu1 }
 0x9b4   : > { %v986_v12 = vmul.f32 0.25, %v981_v11 }
 0x9b6   : > { %v988_v13 = vadd.f32 %v2003_v5, %v986_v12 }
 0x9b8   : > { %v990_v14 = vsel %vm457_vm8, %v988_v13, -inf }
 0x9b9   : > { %991 = vmax.xlane.f32.xlu0 %v990_v14 }
 0x9bb   : > { %v983_v15 = vpop.f32.mrf.mxu1 }
 0x9bc   : > { %v987_v16 = vmul.f32 0.25, %v983_v15 }
 0x9be   : > { %v989_v17 = vadd.f32 %v2003_v5, %v987_v16 }
 0x9c0   : > { %v993_v18 = vsel %vm457_vm8, %v989_v17, -inf }
 0x9c1   : > { %994 = vmax.xlane.f32.xlu2 %v993_v18 }
 0x9d0   : > { %v1079_v19 = vpop.f32.mrf.mxu2 }
 0x9d1   : > { %v1084_v20 = vmul.f32 0.25, %v1079_v19 }
 0x9d3   : > { %v1086_v21 = vadd.f32 %v2003_v5, %v1084_v20 }
 0x9d5   : > { %v1088_v22 = vsel %vm457_vm8, %v1086_v21, -inf }
 0x9d6   : > { %1089 = vmax.xlane.f32.xlu1 %v1088_v22 }
 0x9d8   : > { %v1081_v23 = vpop.f32.mrf.mxu2 }
 0x9d9   : > { %v1085_v24 = vmul.f32 0.25, %v1081_v23 }
 0x9db   : > { %v1087_v25 = vadd.f32 %v2003_v5, %v1085_v24 }
 0x9dd   : > { %v1091_v26 = vsel %vm457_vm8, %v1087_v25, -inf }
 0x9de   : > { %1092 = vmax.xlane.f32.xlu2 %v1091_v26 }
 0xa2c   : > { %v992_v27 = vpop.xlane.xlu0 %991 }
 0xa2d   : > { %v996_v28 = vsub.f32 %v988_v13, %v992_v27 }
 0xa2f   : > { %v998_v29 = vmul.f32 1.442695, %v996_v28 }
 0xa31   : > { %1746 = vpow2.f32 %v998_v29 }
 0xa34   : > { %v995_v30 = vpop.xlane.xlu2 %994 }
 0xa35   : > { %v997_v31 = vsub.f32 %v989_v17, %v995_v30 }
 0xa37   : > { %v1747_v32 = vpop.eup %1746  ;;  %v1000_v33 = vmul.f32 1.442695, %v997_v31 }
 0xa38   : > { %v1002_v34 = vsel %vm457_vm8, %v1747_v32, 0.0 }
 0xa39   : > { %1748 = vpow2.f32 %v1000_v33  ;;  %1003 = vadd.xlane.f32.xlu0 %v1002_v34 }
 0xa3f   : > { %v1749_v35 = vpop.eup %1748 }
 0xa40   : > { %v1005_v37 = vsel %vm457_vm8, %v1749_v35, 0.0 }
 0xa41   : > { %1006 = vadd.xlane.f32.xlu2 %v1005_v37 }
 0xa49   : > { %v1090_v5 = vpop.xlane.xlu1 %1089 }
 0xa4a   : > { %v1094_v38 = vsub.f32 %v1086_v21, %v1090_v5 }
 0xa4c   : > { %v1096_v39 = vmul.f32 1.442695, %v1094_v38 }
 0xa4e   : > { %1750 = vpow2.f32 %v1096_v39  ;;  %v1656_v39 = vld [vmem:[%s2247_s5 + $0x10] sm:$0xff] }
 0xa51   : > { %v1093_v40 = vpop.xlane.xlu2 %1092 }
 0xa52   : > { %v1095_v41 = vsub.f32 %v1087_v25, %v1093_v40  ;;  %v1657_v40 = vld [vmem:[%s2247_s5 + $0x18] sm:$0xff] }
 0xa53   : > { %1174 = vmatpush.bf16.msrb.mxu1 %v1657_v40 }
 0xa54   : > { %v2137_v43 = vpop.eup %1750  ;;  %v1098_v42 = vmul.f32 1.442695, %v1095_v41 }
 0xa55   : > { %v1100_v36 = vsel %vm457_vm8, %v2137_v43, 0.0 }
 0xa56   : > { %1752 = vpow2.f32 %v1098_v42  ;;  %1101 = vadd.xlane.f32.xlu0 %v1100_v36 }
 0xa59   : > { %1039 = vrot.lane.b32.xlu2 %v962_v4, %s1841_s21  ;;  %s335_s21 = scalar_lea.vmem [#allocation2], %s334_s24 }
 0xa5a   : > { %s1441_s16 = sshll.u32 %s335_s21, 4  ;;  %s1442_s16 = int_to_ptr.vmem [resolvable:$true] %s1441_s16 }
 0xa5c   : > { %v2142_v44 = vpop.eup %1752 }
 0xa5d   : > { %v1103_v45 = vsel %vm457_vm8, %v2142_v44, 0.0 }
 0xa5e   : > { %1104 = vadd.xlane.f32.xlu1 %v1103_v45 }
 0xa6a   : > { %1137 = vrot.lane.b32.xlu0 %v962_v4, %s2257_s27  ;;  %s1439_s27 = scalar_lea.hbm %s2251_s9, %s1914_s13 }
 0xa6b   : > { %s1443_s17 = sshll.u32 %s1439_s27, 4  ;;  %s1444_s17 = int_to_ptr.hbm [resolvable:$true] %s1443_s17 }
 0xa6c   : > { %s1787_s22 = sshra.s32 %s1444_s17, 4  ;;  %s1788_s22 = int_to_ptr.hbm [resolvable:$true] %s1787_s22 }
 0xa6d   : > { %s1789_s23 = scalar_lea.hbm %s1788_s22, 1  ;;  %p1794_p0 = scmp.lt.s32.totalorder %s1788_s22, %s2251_s9 }
 0xa6e   : > { %p1790_p11 = scmp.ne.s32.totalorder %s1788_s22, %s1789_s23  ;;  %p1795_p1 = scmp.lt.s32.totalorder %s1793_s14, %s1789_s23 }
 0xa70   : > { %p1791_p12 = pnand %p1790_p11, %p1931_p5  ;;  %p1796_p2 = por %p1795_p1, %p1794_p0 }
 0xa72   : > { %p1792_p13 = pneg %p1791_p12 }
 0xa74   : > { %p1797_p3 = pnand %p1796_p2, %p1792_p13 }
 0xaac   : > { %v1004_v46 = vpop.xlane.xlu0 %1003 }
 0xaad   : > { %1754 = vrcp.f32 %v1004_v46  ;;  %v1019_v61 = vand.u32 2147483648, %v1004_v46  ;;  %vm1013_vm11 = vweird.f32 %v1004_v46  ;;  %v1017_v62 = vand.u32 2147483647, %v1004_v46 }
 0xaaf   : > { %v1020_v3 = vor.u32 1.1754944e-38, %v1019_v61  ;;  %vm1018_vm14 = vcmp.eq.f32.partialorder %v1017_v62, 8.507059e+37  ;;  %v1205_v62 = vunpack.c.l.bf16 %v2109_v60 }
 0xab3   : > { %v1755_v47 = vpop.eup %1754 }
 0xab4   : > { %v1009_v48 = vmul.f32 %v1755_v47, %v1004_v46  ;;  %v1007_v49 = vpop.xlane.xlu2 %1006  ;;  %vm1014_vm10 = vweird.f32 %v1755_v47 }
 0xab5   : > { %1756 = vrcp.f32 %v1007_v49  ;;  %vm1015_vm12 = vmor %vm1013_vm11, %vm1014_vm10  ;;  %v1034_v58 = vand.u32 2147483648, %v1007_v49  ;;  %v1032_v2 = vand.u32 2147483647, %v1007_v49  ;;  %vm1028_vm15 = vweird.f32 %v1007_v49 }
 0xab6   : > { %v1010_v50 = vsub.f32 1.0, %v1009_v48 }
 0xab7   : > { %v1035_v7 = vor.u32 1.1754944e-38, %v1034_v58  ;;  %vm1033_vm3 = vcmp.eq.f32.partialorder %v1032_v2, 8.507059e+37 }
 0xab8   : > { %v1011_v51 = vmul.f32 %v1755_v47, %v1010_v50  ;;  %v1208_v50 = vperm.slane %v2117_v52, 1 }
 0xaba   : > { %v1012_v55 = vadd.f32 %v1755_v47, %v1011_v51 }
 0xabb   : > { %v1757_v54 = vpop.eup %1756 }
 0xabc   : > { %v1024_v56 = vmul.f32 %v1757_v54, %v1007_v49  ;;  %v1040_v59 = vpop.permute.xlu2 %1039  ;;  %v1016_v0 = vsel %vm1015_vm12, %v1755_v47, %v1012_v55  ;;  %vm1029_vm13 = vweird.f32 %v1757_v54  ;;  %v1204_v49 = vunpack.c.l.bf16 %v2107_v57 }
 0xabd   : > { %1052 = vmatpush.bf16.msra.mxu3 %v1040_v59  ;;  %v1021_v6 = vsel %vm1018_vm14, %v1020_v3, %v1016_v0  ;;  %vm1030_vm1 = vmor %vm1028_vm15, %vm1029_vm13 }
 0xabe   : > { %v1025_v63 = vsub.f32 1.0, %v1024_v56  ;;  %v1022_v9 = vmul.f32 %v1747_v32, %v1021_v6 }
 0xac0   : > { %v1026_v1 = vmul.f32 %v1757_v54, %v1025_v63 }
 0xac1   : > { %1197 = vmatpush.bf16.msrb.mxu3 %v1656_v39 }
 0xac2   : > { %v1027_v4 = vadd.f32 %v1757_v54, %v1026_v1 }
 0xac4   : > { %v1031_v53 = vsel %vm1030_vm1, %v1757_v54, %v1027_v4 }
 0xac5   : > { %v1036_v8 = vsel %vm1033_vm3, %v1035_v7, %v1031_v53 }
 0xac6   : > { %v1037_v11 = vmul.f32 %v1749_v35, %v1036_v8 }
 0xac8   : > { %v1038_v12 = vpack.c.bf16 %v1037_v11, %v1022_v9  ;;  %v1659_v9 = vld [vmem:[%s2248_s6 + $0x18] sm:$0xff] }
 0xac9   : > { %v1102_v13 = vpop.xlane.xlu0 %1101  ;;  %1289 = vmatpush.bf16.msra.mxu2 %v1659_v9 }
 0xaca   : > { %1758 = vrcp.f32 %v1102_v13  ;;  %1581 = vmatmul.msk.bf16.vlgmr.msra.gmra.mxu3 %vm457_vm8, %v1038_v12  ;;  %v1117_v22 = vand.u32 2147483648, %v1102_v13  ;;  %vm1111_vm5 = vweird.f32 %v1102_v13  ;;  %v1115_v23 = vand.u32 2147483647, %v1102_v13 }
 0xacc   : > { %v1118_v30 = vor.u32 1.1754944e-38, %v1117_v22  ;;  %vm1116_vm9 = vcmp.eq.f32.partialorder %v1115_v23, 8.507059e+37 }
 0xad0   : > { %v1759_v14 = vpop.eup %1758 }
 0xad1   : > { %v1107_v15 = vmul.f32 %v1759_v14, %v1102_v13  ;;  %v1105_v16 = vpop.xlane.xlu1 %1104  ;;  %vm1112_vm4 = vweird.f32 %v1759_v14 }
 0xad2   : > { %1760 = vrcp.f32 %v1105_v16  ;;  %vm1113_vm6 = vmor %vm1111_vm5, %vm1112_vm4  ;;  %v1132_v25 = vand.u32 2147483648, %v1105_v16  ;;  %v1130_v29 = vand.u32 2147483647, %v1105_v16  ;;  %vm1126_vm10 = vweird.f32 %v1105_v16 }
 0xad3   : > { %v1108_v17 = vsub.f32 1.0, %v1107_v15 }
 0xad4   : > { %v1133_v33 = vor.u32 1.1754944e-38, %v1132_v25  ;;  %vm1131_vm12 = vcmp.eq.f32.partialorder %v1130_v29, 8.507059e+37 }
 0xad5   : > { %v1109_v18 = vmul.f32 %v1759_v14, %v1108_v17 }
 0xad7   : > { %v1110_v20 = vadd.f32 %v1759_v14, %v1109_v18 }
 0xad8   : > { %v1761_v19 = vpop.eup %1760 }
 0xad9   : > { %v1122_v21 = vmul.f32 %v1761_v19, %v1105_v16  ;;  %v1114_v27 = vsel %vm1113_vm6, %v1759_v14, %v1110_v20  ;;  %vm1127_vm7 = vweird.f32 %v1761_v19  ;;  %v1658_v14 = vld [vmem:[%s2248_s6 + $0x10] sm:$0xff] }
 0xada   : > { %v1119_v32 = vsel %vm1116_vm9, %v1118_v30, %v1114_v27  ;;  %vm1128_vm11 = vmor %vm1126_vm10, %vm1127_vm7  ;;  %1290 = vmatpush.bf16.msra.mxu2 %v1658_v14  ;;  %v1255_v30 = vperm.slane %v2117_v52, 2 }
 0xadb   : > { %v1123_v24 = vsub.f32 1.0, %v1122_v21  ;;  %v1120_v37 = vmul.f32 %v2137_v43, %v1119_v32 }
 0xadc   : > { %v1138_v26 = vpop.permute.xlu0 %1137 }
 0xadd   : > { %v1124_v28 = vmul.f32 %v1761_v19, %v1123_v24  ;;  %1150 = vmatpush.bf16.msrb.mxu0 %v1138_v26 }
 0xadf   : > { %v1125_v31 = vadd.f32 %v1761_v19, %v1124_v28 }
 0xae1   : > { %v1129_v34 = vsel %vm1128_vm11, %v1761_v19, %v1125_v31 }
 0xae2   : > { %v1134_v35 = vsel %vm1131_vm12, %v1133_v33, %v1129_v34  ;;  %v1258_v34 = vperm.slane %v2117_v52, 3 }
 0xae3   : > { %v1135_v5 = vmul.f32 %v2142_v44, %v1134_v35 }
 0xae5   : > { %v1136_v38 = vpack.c.bf16 %v1135_v5, %v1120_v37 }
 0xae7   : > { %1583 = vmatmul.msk.bf16.vlgmr.msrb.gmra.mxu0 %vm457_vm8, %v1136_v38 }
 0xb4d   : > { %v1054_v41 = vpop.f32.mrf.mxu3 }
 0xb55   : > { %v1056_v42 = vpop.f32.mrf.mxu3 }
 0xb56   : > { %v1059_v36 = vpack.c.bf16 %v1056_v42, %v1054_v41  ;;  %v1663_v41 = vld [vmem:[%s2249_s7 + $0x38] sm:$0xff]  ;;  %v1662_v42 = vld [vmem:[%s2249_s7 + $0x30] sm:$0xff] }
 0xb57   : > { %1357 = vmatpush.bf16.msra.mxu0 %v1663_v41 }
 0xb58   : > { %1593 = vmatmul.msk.bf16.vlgmr.msrb.gmra.mxu3 %vm457_vm8, %v1059_v36  ;;  %v1661_v36 = vld [vmem:[%s2249_s7 + $0x28] sm:$0xff] }
 0xb5b   : > { %1358 = vmatpush.bf16.msra.mxu0 %v1662_v42 }
 0xb5f   : > { %1359 = vmatpush.bf16.msra.mxu0 %v1661_v36 }
 0xb64   : > { %v1152_v43 = vpop.f32.mrf.mxu0 }
 0xb6c   : > { %v1154_v44 = vpop.f32.mrf.mxu0 }
 0xb6d   : > { %v1157_v45 = vpack.c.bf16 %v1154_v44, %v1152_v43  ;;  %v1660_v43 = vld [vmem:[%s2249_s7 + $0x20] sm:$0xff]  ;;  %v1267_v44 = vperm.slane %v2117_v52, 4 }
 0xb6e   : > { %1360 = vmatpush.bf16.msra.mxu0 %v1660_v43 }
 0xb6f   : > { %1588 = vmatmul.msk.bf16.vlgmr.msrb.gmra.mxu1 %vm457_vm8, %v1157_v45 }
 0xbdb   : > { %v1199_v46 = vpop.f32.mrf.mxu3 }
 0xbe3   : > { %v1201_v56 = vpop.f32.mrf.mxu3 }
 0xbec   : > { %v1176_v47 = vpop.f32.mrf.mxu1 }
 0xbed   : > { %v1200_v48 = vadd.f32 %v1199_v46, %v1176_v47 }
 0xbef   : > { %v1206_v51 = vadd.f32 %v1204_v49, %v1200_v48 }
 0xbf1   : > { %v1209_v54 = vadd.f32 %v1208_v50, %v1206_v51 }
 0xbf3   : > { %v1211_v55 = vsel %vm349_vm0, %v1209_v54, 0.0 }
 0xbf4   : > { %v1178_v59 = vpop.f32.mrf.mxu1  ;;  %1212 = vadd.xlane.f32.xlu1 %v1211_v55 }
 0xbf5   : > { %v1202_v61 = vadd.f32 %v1201_v56, %v1178_v59 }
 0xbf7   : > { %v1207_v63 = vadd.f32 %v1205_v62, %v1202_v61 }
 0xbf9   : > { %v1210_v58 = vadd.f32 %v1208_v50, %v1207_v63 }
 0xbfb   : > { %v1214_v0 = vsel %vm349_vm0, %v1210_v58, 0.0 }
 0xbfc   : > { %1215 = vadd.xlane.f32.xlu1 %v1214_v0 }
 0xc67   : > { %v1213_v1 = vpop.xlane.xlu1 %1212 }
 0xc68   : > { %v1217_v57 = vmul.f32 %v1213_v1, %v1955_v10 }
 0xc6a   : > { %v1219_v2 = vsub.f32 %v1209_v54, %v1217_v57 }
 0xc6c   : > { %v1221_v3 = vmul.f32 %v1219_v2, %v1219_v2 }
 0xc6e   : > { %v1223_v4 = vsel %vm349_vm0, %v1221_v3, 0.0 }
 0xc6f   : > { %1224 = vadd.xlane.f32.xlu1 %v1223_v4  ;;  %v1216_v6 = vpop.xlane.xlu1 %1215 }
 0xc70   : > { %v1218_v7 = vmul.f32 %v1216_v6, %v1955_v10 }
 0xc72   : > { %v1220_v53 = vsub.f32 %v1210_v58, %v1218_v7 }
 0xc74   : > { %v1222_v8 = vmul.f32 %v1220_v53, %v1220_v53 }
 0xc76   : > { %v1226_v60 = vsel %vm349_vm0, %v1222_v8, 0.0 }
 0xc77   : > { %1227 = vadd.xlane.f32.xlu0 %v1226_v60 }
 0xce2   : > { %v1225_v11 = vpop.xlane.xlu1 %1224 }
 0xce3   : > { %v1229_v12 = vmul.f32 %v1225_v11, %v1955_v10 }
 0xce5   : > { %v1231_v13 = vadd.f32 1e-12, %v1229_v12 }
 0xce7   : > { %1762 = vrsqrt.f32 %v1231_v13  ;;  %vm1239_vm13 = vweird.f32 %v1231_v13 }
 0xcea   : > { %v1228_v15 = vpop.xlane.xlu0 %1227 }
 0xceb   : > { %v1230_v16 = vmul.f32 %v1228_v15, %v1955_v10 }
 0xced   : > { %v1763_v17 = vpop.eup %1762  ;;  %v1232_v18 = vadd.f32 1e-12, %v1230_v16 }
 0xcee   : > { %v1234_v19 = vmul.f32 %v1763_v17, %v1231_v13  ;;  %vm1240_vm8 = vweird.f32 %v1763_v17 }
 0xcef   : > { %1764 = vrsqrt.f32 %v1232_v18  ;;  %vm1241_vm14 = vmor %vm1239_vm13, %vm1240_vm8  ;;  %vm1249_vm1 = vweird.f32 %v1232_v18 }
 0xcf0   : > { %v1235_v20 = vmul.f32 %v1763_v17, %v1234_v19  ;;  %v1664_v19 = vld [vmem:[%s2250_s8] sm:$0xff] }
 0xcf2   : > { %v1236_v21 = vmul.f32 0.5, %v1235_v20 }
 0xcf4   : > { %v1237_v22 = vsub.f32 1.5, %v1236_v21 }
 0xcf5   : > { %v1765_v23 = vpop.eup %1764 }
 0xcf6   : > { %v1238_v24 = vmul.f32 %v1763_v17, %v1237_v22  ;;  %v1244_v25 = vmul.f32 %v1765_v23, %v1232_v18  ;;  %vm1250_vm15 = vweird.f32 %v1765_v23  ;;  %v1665_v18 = vld [vmem:[%s2250_s8 + $0x8] sm:$0xff] }
 0xcf7   : > { %vm1251_vm3 = vmor %vm1249_vm1, %vm1250_vm15  ;;  %1422 = vmatpush.bf16.msra.mxu1 %v1665_v18 }
 0xcf8   : > { %v1245_v26 = vmul.f32 %v1765_v23, %v1244_v25  ;;  %v1242_v27 = vsel %vm1241_vm14, %v1763_v17, %v1238_v24 }
 0xcf9   : > { %v1253_v31 = vmul.f32 %v1242_v27, %v1219_v2 }
 0xcfa   : > { %v1246_v28 = vmul.f32 0.5, %v1245_v26 }
 0xcfb   : > { %v1256_v35 = vmul.f32 %v1255_v30, %v1253_v31  ;;  %1423 = vmatpush.bf16.msra.mxu1 %v1664_v19 }
 0xcfc   : > { %v1247_v29 = vsub.f32 1.5, %v1246_v28 }
 0xcfd   : > { %v1259_v38 = vadd.f32 %v1258_v34, %v1256_v35  ;;  %v1772_v35 = vld [vmem:[%s2244_s2] sm:$0xff] }
 0xcfe   : > { %v1248_v32 = vmul.f32 %v1765_v23, %v1247_v29  ;;  %v1389_v29 = vperm.slane %v2117_v52, 6 }
 0xd00   : > { %v1252_v33 = vsel %vm1251_vm3, %v1765_v23, %v1248_v32  ;;  %v1391_v32 = vperm.slane %v2117_v52, 7 }
 0xd01   : > { %v1254_v37 = vmul.f32 %v1252_v33, %v1220_v53  ;;  %v1325_v53 = vperm.slane %v2117_v52, 5 }
 0xd03   : > { %v1257_v5 = vmul.f32 %v1255_v30, %v1254_v37  ;;  %v1411_v37 = vrot.slane %v1772_v35, 2 }
 0xd05   : > { %v1260_v39 = vadd.f32 %v1258_v34, %v1257_v5 }
 0xd07   : > { %v1261_v40 = vpack.c.bf16 %v1260_v39, %v1259_v38 }
 0xd09   : > { %1606 = vmatmul.msk.bf16.vlgmr.msra.gmra.mxu2 %vm349_vm0, %v1261_v40 }
 0xd8c   : > { %v1292_v45 = vpop.f32.mrf.mxu2 }
 0xd8d   : > { %v1293_v46 = vadd.f32 %v1292_v45, %v1267_v44 }
 0xd8f   : > { %v1299_v47 = vmul.f32 0.044715, %v1293_v46  ;;  %v1297_v57 = vmul.f32 0.5, %v1293_v46 }
 0xd91   : > { %v1301_v48 = vmul.f32 %v1299_v47, %v1293_v46 }
 0xd93   : > { %v1303_v49 = vmul.f32 %v1301_v48, %v1293_v46 }
 0xd94   : > { %v1294_v50 = vpop.f32.mrf.mxu2 }
 0xd95   : > { %v1305_v51 = vadd.f32 %v1303_v49, %v1293_v46  ;;  %v1295_v54 = vadd.f32 %v1294_v50, %v1267_v44 }
 0xd97   : > { %v1300_v55 = vmul.f32 0.044715, %v1295_v54  ;;  %v1307_v56 = vmul.f32 0.7978846, %v1305_v51  ;;  %v1298_v2 = vmul.f32 0.5, %v1295_v54 }
 0xd99   : > { %v1302_v59 = vmul.f32 %v1300_v55, %v1295_v54  ;;  %1766 = vtanh.f32 %v1307_v56 }
 0xd9b   : > { %v1304_v61 = vmul.f32 %v1302_v59, %v1295_v54 }
 0xd9d   : > { %v1306_v62 = vadd.f32 %v1304_v61, %v1295_v54 }
 0xd9f   : > { %v1308_v63 = vmul.f32 0.7978846, %v1306_v62  ;;  %v1767_v58 = vpop.eup %1766 }
 0xda0   : > { %v1311_v0 = vadd.f32 1.0, %v1767_v58 }
 0xda1   : > { %1768 = vtanh.f32 %v1308_v63 }
 0xda2   : > { %v1313_v4 = vmul.f32 %v1311_v0, %v1297_v57 }
 0xda7   : > { %v1769_v1 = vpop.eup %1768 }
 0xda8   : > { %v1312_v3 = vadd.f32 1.0, %v1769_v1 }
 0xdaa   : > { %v1314_v6 = vmul.f32 %v1312_v3, %v1298_v2 }
 0xdac   : > { %v1315_v7 = vpack.c.bf16 %v1314_v6, %v1313_v4 }
 0xdae   : > { %1631 = vmatmul.msk.bf16.vlgmr.msra.gmra.mxu0 %vm843_vm2, %v1315_v7 }
 0xe2b   : > { %v1362_v8 = vpop.f32.mrf.mxu0 }
 0xe2c   : > { %v1363_v60 = vadd.f32 %v1362_v8, %v1325_v53 }
 0xe2e   : > { %v1366_v9 = vadd.f32 %v1363_v60, %v1259_v38 }
 0xe30   : > { %v1367_v11 = vsel %vm349_vm0, %v1366_v9, 0.0 }
 0xe31   : > { %1368 = vadd.xlane.f32.xlu2 %v1367_v11 }
 0xe33   : > { %v1364_v12 = vpop.f32.mrf.mxu0 }
 0xea4   : > { %v1369_v13 = vpop.xlane.xlu2 %1368 }
 0xea5   : > { %v1370_v14 = vmul.f32 %v1369_v13, %v1955_v10 }
 0xea7   : > { %v1371_v15 = vsub.f32 %v1366_v9, %v1370_v14 }
 0xea9   : > { %v1372_v16 = vmul.f32 %v1371_v15, %v1371_v15 }
 0xeab   : > { %v1373_v17 = vsel %vm349_vm0, %v1372_v16, 0.0 }
 0xeac   : > { %1374 = vadd.xlane.f32.xlu1 %v1373_v17 }
 0xf1f   : > { %v1375_v20 = vpop.xlane.xlu1 %1374 }
 0xf20   : > { %v1376_v21 = vmul.f32 %v1375_v20, %v1955_v10 }
 0xf22   : > { %v1377_v22 = vadd.f32 1e-12, %v1376_v21 }
 0xf24   : > { %1770 = vrsqrt.f32 %v1377_v22  ;;  %vm1384_vm4 = vweird.f32 %v1377_v22 }
 0xf2a   : > { %v1771_v23 = vpop.eup %1770 }
 0xf2b   : > { %v1379_v24 = vmul.f32 %v1771_v23, %v1377_v22  ;;  %vm1385_vm2 = vweird.f32 %v1771_v23 }
 0xf2c   : > { %vm1386_vm5 = vmor %vm1384_vm4, %vm1385_vm2 }
 0xf2d   : > { %v1380_v25 = vmul.f32 %v1771_v23, %v1379_v24 }
 0xf2f   : > { %v1381_v26 = vmul.f32 0.5, %v1380_v25 }
 0xf31   : > { %v1382_v27 = vsub.f32 1.5, %v1381_v26 }
 0xf33   : > { %v1383_v28 = vmul.f32 %v1771_v23, %v1382_v27 }
 0xf35   : > { %v1387_v30 = vsel %vm1386_vm5, %v1771_v23, %v1383_v28 }
 0xf36   : > { %v1388_v31 = vmul.f32 %v1387_v30, %v1371_v15 }
 0xf38   : > { %v1390_v10 = vmul.f32 %v1389_v29, %v1388_v31 }
 0xf3a   : > { %v1392_v33 = vadd.f32 %v1391_v32, %v1390_v10 }
 0xf3c   : > { %v1393_v34 = vpack.c.bf16 %v1392_v33, %v1392_v33 }
 0xf3e   : > { %1640 = vmatmul.msk.bf16.vlgmr.msra.gmra.mxu1 %vm349_vm0, %v1393_v34 }
 0xfbb   : > { %v1425_v52 = vpop.f32.mrf.mxu1 }
 0xfbc   : > { %v1426_v5 = vadd.f32 %v1425_v52, %v1411_v37 }
 0xfbe   : > { %1429 = vst [vmem:[%s335_s21] sm:$0x1] %v1426_v5 }
 0xfbf   : > { %1800 = shalt.err (!%p1797_p3)
}
 0xfc0   : > { %1666 = dma.vmem_to_hbm [thread:$0]  (%p1931_p5), %s1442_s16, 16, %s1444_s17, %s1431_s25  }
 0xfc3   : > { %v1427_v38 = vpop.f32.mrf.mxu1 }
 0xfc4 PF: > { %p1672_p4 = scmp.ge.s32.totalorder %s1835_s12, 2  ;;  %s1455_s24 = sand.u32 1, %s1823_s30  }
 0xfc5   : > { %s1456_s27 = scalar_lea.sflag [#allocation3], %s1455_s24 }
 0xfc6   : > { %p1669_p7 = pnand %p1672_p4, %p1935_p6 }
 0xfc8   : > { %p1670_p8 = pneg %p1669_p7 }
 0xfca   : > { %1818 = dma.done.wait (%p1670_p8), %s1456_s27, 16  }
 0xfcb   : > { %1820 = vsyncadd (%p1670_p8), %s1456_s27, 4294967280  ;;  %p19_p9 = scmp.ge.s32.totalorder %s1918_s15, 4   ;;  %s2258_s30 = smov %s1827_s10 }
 0xfcc   : > { %s2259_s10 = smov %s1831_s11  ;;  %s2260_s11 = smov %s1929_s18 }
 0xfcd   : > { %s2261_s12 = smov %s1918_s15  ;;  %21 = sbr.rel (!%p19_p9) target bundleno = 3 (0x3), region = 99 }
 0xfd2   :  { %1461 = vsyncpa [#allocation3], 1 }
 0xfd3   :  { %1463 = vsyncpa [#allocation3 + $0x1], 1 }

</bundles_post_ra>
